<compile_context>
chip_gen: v7x
topology: tpu7x:2x2x1
jax: 0.10.0
libtpu: 0.0.40
codegen_flags: <defaults>
</compile_context>

<pallas_src>
import functools

import jax
import jax.numpy as jnp
from jax.experimental import pallas as pl
from jax.experimental.pallas import tpu as pltpu


def _geometry_attn_kernel(
    x_ref, src_ref, xpe_ref, spe_ref,
    wqh_ref, wkh_ref, wvh_ref, wmh_ref,
    w1x_ref, w1m_ref, w2_ref,
    g1_ref, b1_ref, g2_ref, b2_ref,
    out_ref,
    *, nhead: int, head_dim: int, eps: float = 1e-5,
):
    bt, L, D = x_ref.shape
    S = src_ref.shape[1]
    R = bt * L          # rows fed to every matmul (M dimension)
    Rs = bt * S

    # Flatten (Bt, L, D) -> (Bt*L, D): merges leading dims only (L, S are
    # multiples of 8, so this is a layout-preserving shape cast).
    x2 = x_ref[...].reshape(R, D)
    q2 = x2 + xpe_ref[...].reshape(R, D)
    s2 = src_ref[...].reshape(Rs, D)
    k2 = s2 + spe_ref[...].reshape(Rs, D)
    v2 = s2

    # Per-head attention.  Head split lives in the pre-reshaped weights, so
    # activations are never lane-sliced; merge distributes over the head
    # concat:  merge(concat_h o_h) = sum_h o_h @ Wm_h.
    msg = None
    for h in range(nhead):
        qh = jnp.dot(q2, wqh_ref[h], preferred_element_type=jnp.float32)  # (R, dh), scale folded in
        kh = jnp.dot(k2, wkh_ref[h], preferred_element_type=jnp.float32)  # (Rs, dh)
        vh = jnp.dot(v2, wvh_ref[h], preferred_element_type=jnp.float32)  # (Rs, dh)

        q3 = qh.reshape(bt, L, head_dim)
        k3 = kh.reshape(bt, S, head_dim)
        v3 = vh.reshape(bt, S, head_dim)

        a = jnp.einsum('bld,bsd->bls', q3, k3,
                       preferred_element_type=jnp.float32)              # (Bt, L, S)
        a = a - jnp.max(a, axis=-1, keepdims=True)
        a = jnp.exp(a)
        a = a * pl.reciprocal(jnp.sum(a, axis=-1, keepdims=True), approx=True)
        o3 = jnp.einsum('bls,bsd->bld', a, v3,
                        preferred_element_type=jnp.float32)             # (Bt, L, dh)

        part = jnp.dot(o3.reshape(R, head_dim), wmh_ref[h],
                       preferred_element_type=jnp.float32)              # (R, D)
        msg = part if msg is None else msg + part

    # LayerNorm1
    mu1 = jnp.mean(msg, axis=-1, keepdims=True)
    var1 = jnp.mean((msg - mu1) ** 2, axis=-1, keepdims=True)
    msg = (msg - mu1) * jax.lax.rsqrt(var1 + eps) * g1_ref[...] + b1_ref[...]

    # MLP on concat([x, msg]) with the concat split into two matmuls:
    #   cat @ W1 == x @ W1[:D] + msg @ W1[D:]
    h1 = (jnp.dot(x2, w1x_ref[...], preferred_element_type=jnp.float32)
          + jnp.dot(msg, w1m_ref[...], preferred_element_type=jnp.float32))
    h1 = jnp.maximum(h1, 0.0)
    h2 = jnp.dot(h1, w2_ref[...], preferred_element_type=jnp.float32)    # (R, D)

    # LayerNorm2 + residual
    mu2 = jnp.mean(h2, axis=-1, keepdims=True)
    var2 = jnp.mean((h2 - mu2) ** 2, axis=-1, keepdims=True)
    h2 = (h2 - mu2) * jax.lax.rsqrt(var2 + eps) * g2_ref[...] + b2_ref[...]

    out_ref[...] = (x2 + h2).reshape(bt, L, D).astype(out_ref.dtype)


def prepare_params(params, *, d_model, nhead):
    """One-time weight transform (outside the kernel / per-call hot path)."""
    dh = d_model // nhead
    scale = 1.0 / (dh ** 0.5)
    # (in, out) linear weights -> per-head layouts.
    wqh = (params["wq"] * scale).reshape(d_model, nhead, dh).transpose(1, 0, 2)  # (H, D, dh)
    wkh = params["wk"].reshape(d_model, nhead, dh).transpose(1, 0, 2)            # (H, D, dh)
    wvh = params["wv"].reshape(d_model, nhead, dh).transpose(1, 0, 2)            # (H, D, dh)
    wmh = params["wm"].reshape(nhead, dh, d_model)                               # (H, dh, D)
    w1x = params["w1"][:d_model]                                                  # (D, 2D)
    w1m = params["w1"][d_model:]                                                  # (D, 2D)
    return dict(wqh=wqh, wkh=wkh, wvh=wvh, wmh=wmh, w1x=w1x, w1m=w1m,
                w2=params["w2"], g1=params["g1"], b1=params["b1"],
                g2=params["g2"], b2=params["b2"])


def geometry_attention_layer(x, source, x_pe, source_pe, prepped, *,
                             nhead, batch_tile=None):
    """x, x_pe: (B, L, D); source, source_pe: (B, S, D). Returns (B, L, D)."""
    B, L, D = x.shape
    S = source.shape[1]
    dh = D // nhead
    if batch_tile is None:
        batch_tile = 2 if B % 2 == 0 else 1
    bt = batch_tile
    assert B % bt == 0, "batch_tile must divide batch"

    seq_spec = lambda n: pl.BlockSpec((bt, n, D), lambda b: (b, 0, 0))
    const = lambda shp: pl.BlockSpec(shp, lambda b, _s=None: (0,) * len(shp))

    kernel = functools.partial(_geometry_attn_kernel, nhead=nhead, head_dim=dh)

    return pl.pallas_call(
        kernel,
        out_shape=jax.ShapeDtypeStruct((B, L, D), x.dtype),
        grid_spec=pltpu.PrefetchScalarGridSpec(
            num_scalar_prefetch=0,
            grid=(B // bt,),
            in_specs=[
                seq_spec(L),                     # x
                seq_spec(S),                     # source
                seq_spec(L),                     # x_pe
                seq_spec(S),                     # source_pe
                const((nhead, D, dh)),           # wq per-head (scale folded)
                const((nhead, D, dh)),           # wk per-head
                const((nhead, D, dh)),           # wv per-head
                const((nhead, dh, D)),           # merge per-head rows
                const((D, 2 * D)),               # mlp w1[:D]
                const((D, 2 * D)),               # mlp w1[D:]
                const((2 * D, D)),               # mlp w2
                const((1, D)),                   # ln1 gamma
                const((1, D)),                   # ln1 beta
                const((1, D)),                   # ln2 gamma
                const((1, D)),                   # ln2 beta
            ],
            out_specs=pl.BlockSpec((bt, L, D), lambda b: (b, 0, 0)),
        ),
        compiler_params=pltpu.CompilerParams(
            dimension_semantics=("parallel",),
            vmem_limit_bytes=32 * 1024 * 1024,
        ),
    )(
        x, source, x_pe, source_pe,
        prepped["wqh"], prepped["wkh"], prepped["wvh"], prepped["wmh"],
        prepped["w1x"], prepped["w1m"], prepped["w2"],
        prepped["g1"], prepped["b1"], prepped["g2"], prepped["b2"],
    )


def _reference(x, source, x_pe, source_pe, params, *, nhead, eps=1e-5):
    """Pure-JAX reference mirroring the PyTorch forward (sinusoidal PE, no mask)."""
    B, L, D = x.shape
    dh = D // nhead
    q = x + x_pe
    k = source + source_pe
    v = source
    qw = (q @ params["wq"]).reshape(B, L, nhead, dh)
    kw = (k @ params["wk"]).reshape(B, -1, nhead, dh)
    vw = (v @ params["wv"]).reshape(B, -1, nhead, dh)
    a = jnp.einsum("nlhd,nshd->nlsh", qw, kw) / (dh ** 0.5)
    a = jax.nn.softmax(a, axis=2)
    o = jnp.einsum("nlsh,nshd->nlhd", a, vw).reshape(B, L, D)
    msg = o @ params["wm"]
    mu = msg.mean(-1, keepdims=True)
    var = ((msg - mu) ** 2).mean(-1, keepdims=True)
    msg = (msg - mu) / jnp.sqrt(var + eps) * params["g1"][0] + params["b1"][0]
    cat = jnp.concatenate([x, msg], axis=-1)
    h = jnp.maximum(cat @ params["w1"], 0.0) @ params["w2"]
    mu2 = h.mean(-1, keepdims=True)
    var2 = ((h - mu2) ** 2).mean(-1, keepdims=True)
    h = (h - mu2) / jnp.sqrt(var2 + eps) * params["g2"][0] + params["b2"][0]
    return x + h


if __name__ == "__main__":
    # config: feature_dim=128, n_head=4, pe_type='sinusoidal'
    # D=128 keeps the output block lane-dense; B=4 with batch_tile=2 gives a
    # parallel grid extent of 2 (both v7x TensorCores get work).
    B, L, S, D, NHEAD = 4, 16, 16, 128, 4

    key = jax.random.PRNGKey(0)
    ks = jax.random.split(key, 10)

    x = jax.random.normal(ks[0], (B, L, D), jnp.float32)
    source = jax.random.normal(ks[1], (B, S, D), jnp.float32)
    x_pe = 0.1 * jax.random.normal(ks[2], (B, L, D), jnp.float32)
    source_pe = 0.1 * jax.random.normal(ks[3], (B, S, D), jnp.float32)

    scale = 1.0 / (D ** 0.5)
    params = {
        # Linear weights stored as (in, out) == PyTorch weight.T
        "wq": scale * jax.random.normal(ks[4], (D, D), jnp.float32),
        "wk": scale * jax.random.normal(ks[5], (D, D), jnp.float32),
        "wv": scale * jax.random.normal(ks[6], (D, D), jnp.float32),
        "wm": scale * jax.random.normal(ks[7], (D, D), jnp.float32),
        "w1": scale * jax.random.normal(ks[8], (2 * D, 2 * D), jnp.float32),
        "w2": scale * jax.random.normal(ks[9], (2 * D, D), jnp.float32),
        # LayerNorm affine params (PyTorch default init: ones / zeros)
        "g1": jnp.ones((1, D), jnp.float32),
        "b1": jnp.zeros((1, D), jnp.float32),
        "g2": jnp.ones((1, D), jnp.float32),
        "b2": jnp.zeros((1, D), jnp.float32),
    }

    prepped = prepare_params(params, d_model=D, nhead=NHEAD)
    out = geometry_attention_layer(x, source, x_pe, source_pe, prepped,
                                   nhead=NHEAD, batch_tile=2)
    out = jax.block_until_ready(out)

    ref = _reference(x, source, x_pe, source_pe, params, nhead=NHEAD)
    assert out.shape == (B, L, D)
    # Tolerance loosened vs. 1e-4 because the softmax uses the EUP approximate
    # reciprocal (pl.reciprocal(approx=True)); real bugs produce O(1) errors.
    max_err = float(jnp.max(jnp.abs(out - ref)))
    assert jnp.allclose(out, ref, atol=2e-2, rtol=2e-2), max_err
    # TODO(synk): 'rotary' pe_type branch (VolPE.embed_rotary) and the optional
    # x_mask/source_mask attention masks are not implemented; only the
    # sinusoidal / unmasked path runs in-kernel.
    print("KERNEL_OK")
</pallas_src>

<mosaic_0001>
module attributes {stable_mosaic.version = 11 : i64} {
  func.func @_geometry_attn_kernel(%arg0: i32, %arg1: memref<2x16x128xf32, #tpu.memory_space<vmem>>, %arg2: memref<2x16x128xf32, #tpu.memory_space<vmem>>, %arg3: memref<2x16x128xf32, #tpu.memory_space<vmem>>, %arg4: memref<2x16x128xf32, #tpu.memory_space<vmem>>, %arg5: memref<4x128x32xf32, #tpu.memory_space<vmem>>, %arg6: memref<4x128x32xf32, #tpu.memory_space<vmem>>, %arg7: memref<4x128x32xf32, #tpu.memory_space<vmem>>, %arg8: memref<4x32x128xf32, #tpu.memory_space<vmem>>, %arg9: memref<128x256xf32, #tpu.memory_space<vmem>>, %arg10: memref<128x256xf32, #tpu.memory_space<vmem>>, %arg11: memref<256x128xf32, #tpu.memory_space<vmem>>, %arg12: memref<1x128xf32, #tpu.memory_space<vmem>>, %arg13: memref<1x128xf32, #tpu.memory_space<vmem>>, %arg14: memref<1x128xf32, #tpu.memory_space<vmem>>, %arg15: memref<1x128xf32, #tpu.memory_space<vmem>>, %arg16: memref<2x16x128xf32, #tpu.memory_space<vmem>>) attributes {dimension_semantics = [#tpu.dimension_semantics<parallel>], iteration_bounds = array<i64: 2>, scalar_prefetch = 0 : i64, scratch_operands = 0 : i64, tpu.core_type = #tpu.core_type<tc>, window_params = [{transform_indices = @transform_0, window_bounds = array<i64: 2, 16, 128>}, {transform_indices = @transform_1, window_bounds = array<i64: 2, 16, 128>}, {transform_indices = @transform_2, window_bounds = array<i64: 2, 16, 128>}, {transform_indices = @transform_3, window_bounds = array<i64: 2, 16, 128>}, {pipeline_mode = #tpu.pipeline_mode<synchronous>, transform_indices = @transform_4, window_bounds = array<i64: 4, 128, 32>}, {pipeline_mode = #tpu.pipeline_mode<synchronous>, transform_indices = @transform_5, window_bounds = array<i64: 4, 128, 32>}, {pipeline_mode = #tpu.pipeline_mode<synchronous>, transform_indices = @transform_6, window_bounds = array<i64: 4, 128, 32>}, {pipeline_mode = #tpu.pipeline_mode<synchronous>, transform_indices = @transform_7, window_bounds = array<i64: 4, 32, 128>}, {pipeline_mode = #tpu.pipeline_mode<synchronous>, transform_indices = @transform_8, window_bounds = array<i64: 128, 256>}, {pipeline_mode = #tpu.pipeline_mode<synchronous>, transform_indices = @transform_9, window_bounds = array<i64: 128, 256>}, {pipeline_mode = #tpu.pipeline_mode<synchronous>, transform_indices = @transform_10, window_bounds = array<i64: 256, 128>}, {pipeline_mode = #tpu.pipeline_mode<synchronous>, transform_indices = @transform_11, window_bounds = array<i64: 1, 128>}, {pipeline_mode = #tpu.pipeline_mode<synchronous>, transform_indices = @transform_12, window_bounds = array<i64: 1, 128>}, {pipeline_mode = #tpu.pipeline_mode<synchronous>, transform_indices = @transform_13, window_bounds = array<i64: 1, 128>}, {pipeline_mode = #tpu.pipeline_mode<synchronous>, transform_indices = @transform_14, window_bounds = array<i64: 1, 128>}, {transform_indices = @transform_15, window_bounds = array<i64: 2, 16, 128>}]} {
    %c0 = arith.constant 0 : index
    %c0_0 = arith.constant 0 : index
    %c0_1 = arith.constant 0 : index
    %0 = vector.load %arg1[%c0, %c0_0, %c0_1] : memref<2x16x128xf32, #tpu.memory_space<vmem>>, vector<2x16x128xf32>
    %1 = vector.shape_cast %0 : vector<2x16x128xf32> to vector<32x128xf32>
    %c0_2 = arith.constant 0 : index
    %c0_3 = arith.constant 0 : index
    %c0_4 = arith.constant 0 : index
    %2 = vector.load %arg3[%c0_2, %c0_3, %c0_4] : memref<2x16x128xf32, #tpu.memory_space<vmem>>, vector<2x16x128xf32>
    %3 = vector.shape_cast %2 : vector<2x16x128xf32> to vector<32x128xf32>
    %4 = arith.addf %1, %3 : vector<32x128xf32>
    %c0_5 = arith.constant 0 : index
    %c0_6 = arith.constant 0 : index
    %c0_7 = arith.constant 0 : index
    %5 = vector.load %arg2[%c0_5, %c0_6, %c0_7] : memref<2x16x128xf32, #tpu.memory_space<vmem>>, vector<2x16x128xf32>
    %6 = vector.shape_cast %5 : vector<2x16x128xf32> to vector<32x128xf32>
    %c0_8 = arith.constant 0 : index
    %c0_9 = arith.constant 0 : index
    %c0_10 = arith.constant 0 : index
    %7 = vector.load %arg4[%c0_8, %c0_9, %c0_10] : memref<2x16x128xf32, #tpu.memory_space<vmem>>, vector<2x16x128xf32>
    %8 = vector.shape_cast %7 : vector<2x16x128xf32> to vector<32x128xf32>
    %9 = arith.addf %6, %8 : vector<32x128xf32>
    %c0_11 = arith.constant 0 : index
    %c0_12 = arith.constant 0 : index
    %c0_13 = arith.constant 0 : index
    %10 = vector.load %arg5[%c0_11, %c0_12, %c0_13] : memref<4x128x32xf32, #tpu.memory_space<vmem>>, vector<1x128x32xf32>
    %11 = vector.shape_cast %10 : vector<1x128x32xf32> to vector<128x32xf32>
    %cst = arith.constant dense<0.000000e+00> : vector<32x32xf32>
    %12 = tpu.matmul %4, %11, %cst {dimension_numbers = #tpu.dot_dimension_numbers<[1], [0], [0], [1], [0, 0, 1, 1], [], []>} : vector<32x128xf32>, vector<128x32xf32>, vector<32x32xf32> -> vector<32x32xf32>
    %c0_14 = arith.constant 0 : index
    %c0_15 = arith.constant 0 : index
    %c0_16 = arith.constant 0 : index
    %13 = vector.load %arg6[%c0_14, %c0_15, %c0_16] : memref<4x128x32xf32, #tpu.memory_space<vmem>>, vector<1x128x32xf32>
    %14 = vector.shape_cast %13 : vector<1x128x32xf32> to vector<128x32xf32>
    %cst_17 = arith.constant dense<0.000000e+00> : vector<32x32xf32>
    %15 = tpu.matmul %9, %14, %cst_17 {dimension_numbers = #tpu.dot_dimension_numbers<[1], [0], [0], [1], [0, 0, 1, 1], [], []>} : vector<32x128xf32>, vector<128x32xf32>, vector<32x32xf32> -> vector<32x32xf32>
    %c0_18 = arith.constant 0 : index
    %c0_19 = arith.constant 0 : index
    %c0_20 = arith.constant 0 : index
    %16 = vector.load %arg7[%c0_18, %c0_19, %c0_20] : memref<4x128x32xf32, #tpu.memory_space<vmem>>, vector<1x128x32xf32>
    %17 = vector.shape_cast %16 : vector<1x128x32xf32> to vector<128x32xf32>
    %cst_21 = arith.constant dense<0.000000e+00> : vector<32x32xf32>
    %18 = tpu.matmul %6, %17, %cst_21 {dimension_numbers = #tpu.dot_dimension_numbers<[1], [0], [0], [1], [0, 0, 1, 1], [], []>} : vector<32x128xf32>, vector<128x32xf32>, vector<32x32xf32> -> vector<32x32xf32>
    %19 = vector.shape_cast %12 : vector<32x32xf32> to vector<2x16x32xf32>
    %20 = vector.shape_cast %15 : vector<32x32xf32> to vector<2x16x32xf32>
    %21 = vector.shape_cast %18 : vector<32x32xf32> to vector<2x16x32xf32>
    "tpu.trace_start"() <{level = 10 : i32, message = "bld,bsd->bls"}> : () -> ()
    %cst_22 = arith.constant dense<0.000000e+00> : vector<2x16x16xf32>
    %22 = tpu.matmul %19, %20, %cst_22 {dimension_numbers = #tpu.dot_dimension_numbers<[2], [2], [1], [1], [0, 0, 0, 1, 1, 1], [0], [0]>} : vector<2x16x32xf32>, vector<2x16x32xf32>, vector<2x16x16xf32> -> vector<2x16x16xf32>
    "tpu.trace_stop"() : () -> ()
    %cst_23 = arith.constant dense<0xFF800000> : vector<2x16xf32>
    %23 = vector.multi_reduction <maximumf>, %22, %cst_23 [2] : vector<2x16x16xf32> to vector<2x16xf32>
    %24 = vector.shape_cast %23 : vector<2x16xf32> to vector<2x16x1xf32>
    %25 = vector.broadcast %24 : vector<2x16x1xf32> to vector<2x16x16xf32>
    %26 = arith.subf %22, %25 : vector<2x16x16xf32>
    %27 = math.exp %26 : vector<2x16x16xf32>
    %cst_24 = arith.constant dense<0.000000e+00> : vector<2x16xf32>
    %28 = vector.multi_reduction <add>, %27, %cst_24 [2] : vector<2x16x16xf32> to vector<2x16xf32>
    %29 = vector.shape_cast %28 : vector<2x16xf32> to vector<2x16x1xf32>
    %30 = tpu.reciprocal %29 {approx = true} : vector<2x16x1xf32> -> vector<2x16x1xf32>
    %31 = vector.broadcast %30 : vector<2x16x1xf32> to vector<2x16x16xf32>
    %32 = arith.mulf %27, %31 : vector<2x16x16xf32>
    "tpu.trace_start"() <{level = 10 : i32, message = "bls,bsd->bld"}> : () -> ()
    %cst_25 = arith.constant dense<0.000000e+00> : vector<2x16x32xf32>
    %33 = tpu.matmul %32, %21, %cst_25 {dimension_numbers = #tpu.dot_dimension_numbers<[2], [1], [1], [2], [0, 0, 0, 1, 1, 2], [0], [0]>} : vector<2x16x16xf32>, vector<2x16x32xf32>, vector<2x16x32xf32> -> vector<2x16x32xf32>
    "tpu.trace_stop"() : () -> ()
    %34 = vector.shape_cast %33 : vector<2x16x32xf32> to vector<32x32xf32>
    %c0_26 = arith.constant 0 : index
    %c0_27 = arith.constant 0 : index
    %c0_28 = arith.constant 0 : index
    %35 = vector.load %arg8[%c0_26, %c0_27, %c0_28] : memref<4x32x128xf32, #tpu.memory_space<vmem>>, vector<1x32x128xf32>
    %36 = vector.shape_cast %35 : vector<1x32x128xf32> to vector<32x128xf32>
    %cst_29 = arith.constant dense<0.000000e+00> : vector<32x128xf32>
    %37 = tpu.matmul %34, %36, %cst_29 {dimension_numbers = #tpu.dot_dimension_numbers<[1], [0], [0], [1], [0, 0, 1, 1], [], []>} : vector<32x32xf32>, vector<32x128xf32>, vector<32x128xf32> -> vector<32x128xf32>
    %c1 = arith.constant 1 : index
    %c0_30 = arith.constant 0 : index
    %c0_31 = arith.constant 0 : index
    %38 = vector.load %arg5[%c1, %c0_30, %c0_31] : memref<4x128x32xf32, #tpu.memory_space<vmem>>, vector<1x128x32xf32>
    %39 = vector.shape_cast %38 : vector<1x128x32xf32> to vector<128x32xf32>
    %cst_32 = arith.constant dense<0.000000e+00> : vector<32x32xf32>
    %40 = tpu.matmul %4, %39, %cst_32 {dimension_numbers = #tpu.dot_dimension_numbers<[1], [0], [0], [1], [0, 0, 1, 1], [], []>} : vector<32x128xf32>, vector<128x32xf32>, vector<32x32xf32> -> vector<32x32xf32>
    %c1_33 = arith.constant 1 : index
    %c0_34 = arith.constant 0 : index
    %c0_35 = arith.constant 0 : index
    %41 = vector.load %arg6[%c1_33, %c0_34, %c0_35] : memref<4x128x32xf32, #tpu.memory_space<vmem>>, vector<1x128x32xf32>
    %42 = vector.shape_cast %41 : vector<1x128x32xf32> to vector<128x32xf32>
    %cst_36 = arith.constant dense<0.000000e+00> : vector<32x32xf32>
    %43 = tpu.matmul %9, %42, %cst_36 {dimension_numbers = #tpu.dot_dimension_numbers<[1], [0], [0], [1], [0, 0, 1, 1], [], []>} : vector<32x128xf32>, vector<128x32xf32>, vector<32x32xf32> -> vector<32x32xf32>
    %c1_37 = arith.constant 1 : index
    %c0_38 = arith.constant 0 : index
    %c0_39 = arith.constant 0 : index
    %44 = vector.load %arg7[%c1_37, %c0_38, %c0_39] : memref<4x128x32xf32, #tpu.memory_space<vmem>>, vector<1x128x32xf32>
    %45 = vector.shape_cast %44 : vector<1x128x32xf32> to vector<128x32xf32>
    %cst_40 = arith.constant dense<0.000000e+00> : vector<32x32xf32>
    %46 = tpu.matmul %6, %45, %cst_40 {dimension_numbers = #tpu.dot_dimension_numbers<[1], [0], [0], [1], [0, 0, 1, 1], [], []>} : vector<32x128xf32>, vector<128x32xf32>, vector<32x32xf32> -> vector<32x32xf32>
    %47 = vector.shape_cast %40 : vector<32x32xf32> to vector<2x16x32xf32>
    %48 = vector.shape_cast %43 : vector<32x32xf32> to vector<2x16x32xf32>
    %49 = vector.shape_cast %46 : vector<32x32xf32> to vector<2x16x32xf32>
    "tpu.trace_start"() <{level = 10 : i32, message = "bld,bsd->bls"}> : () -> ()
    %cst_41 = arith.constant dense<0.000000e+00> : vector<2x16x16xf32>
    %50 = tpu.matmul %47, %48, %cst_41 {dimension_numbers = #tpu.dot_dimension_numbers<[2], [2], [1], [1], [0, 0, 0, 1, 1, 1], [0], [0]>} : vector<2x16x32xf32>, vector<2x16x32xf32>, vector<2x16x16xf32> -> vector<2x16x16xf32>
    "tpu.trace_stop"() : () -> ()
    %cst_42 = arith.constant dense<0xFF800000> : vector<2x16xf32>
    %51 = vector.multi_reduction <maximumf>, %50, %cst_42 [2] : vector<2x16x16xf32> to vector<2x16xf32>
    %52 = vector.shape_cast %51 : vector<2x16xf32> to vector<2x16x1xf32>
    %53 = vector.broadcast %52 : vector<2x16x1xf32> to vector<2x16x16xf32>
    %54 = arith.subf %50, %53 : vector<2x16x16xf32>
    %55 = math.exp %54 : vector<2x16x16xf32>
    %cst_43 = arith.constant dense<0.000000e+00> : vector<2x16xf32>
    %56 = vector.multi_reduction <add>, %55, %cst_43 [2] : vector<2x16x16xf32> to vector<2x16xf32>
    %57 = vector.shape_cast %56 : vector<2x16xf32> to vector<2x16x1xf32>
    %58 = tpu.reciprocal %57 {approx = true} : vector<2x16x1xf32> -> vector<2x16x1xf32>
    %59 = vector.broadcast %58 : vector<2x16x1xf32> to vector<2x16x16xf32>
    %60 = arith.mulf %55, %59 : vector<2x16x16xf32>
    "tpu.trace_start"() <{level = 10 : i32, message = "bls,bsd->bld"}> : () -> ()
    %cst_44 = arith.constant dense<0.000000e+00> : vector<2x16x32xf32>
    %61 = tpu.matmul %60, %49, %cst_44 {dimension_numbers = #tpu.dot_dimension_numbers<[2], [1], [1], [2], [0, 0, 0, 1, 1, 2], [0], [0]>} : vector<2x16x16xf32>, vector<2x16x32xf32>, vector<2x16x32xf32> -> vector<2x16x32xf32>
    "tpu.trace_stop"() : () -> ()
    %62 = vector.shape_cast %61 : vector<2x16x32xf32> to vector<32x32xf32>
    %c1_45 = arith.constant 1 : index
    %c0_46 = arith.constant 0 : index
    %c0_47 = arith.constant 0 : index
    %63 = vector.load %arg8[%c1_45, %c0_46, %c0_47] : memref<4x32x128xf32, #tpu.memory_space<vmem>>, vector<1x32x128xf32>
    %64 = vector.shape_cast %63 : vector<1x32x128xf32> to vector<32x128xf32>
    %cst_48 = arith.constant dense<0.000000e+00> : vector<32x128xf32>
    %65 = tpu.matmul %62, %64, %cst_48 {dimension_numbers = #tpu.dot_dimension_numbers<[1], [0], [0], [1], [0, 0, 1, 1], [], []>} : vector<32x32xf32>, vector<32x128xf32>, vector<32x128xf32> -> vector<32x128xf32>
    %66 = arith.addf %37, %65 : vector<32x128xf32>
    %c2 = arith.constant 2 : index
    %c0_49 = arith.constant 0 : index
    %c0_50 = arith.constant 0 : index
    %67 = vector.load %arg5[%c2, %c0_49, %c0_50] : memref<4x128x32xf32, #tpu.memory_space<vmem>>, vector<1x128x32xf32>
    %68 = vector.shape_cast %67 : vector<1x128x32xf32> to vector<128x32xf32>
    %cst_51 = arith.constant dense<0.000000e+00> : vector<32x32xf32>
    %69 = tpu.matmul %4, %68, %cst_51 {dimension_numbers = #tpu.dot_dimension_numbers<[1], [0], [0], [1], [0, 0, 1, 1], [], []>} : vector<32x128xf32>, vector<128x32xf32>, vector<32x32xf32> -> vector<32x32xf32>
    %c2_52 = arith.constant 2 : index
    %c0_53 = arith.constant 0 : index
    %c0_54 = arith.constant 0 : index
    %70 = vector.load %arg6[%c2_52, %c0_53, %c0_54] : memref<4x128x32xf32, #tpu.memory_space<vmem>>, vector<1x128x32xf32>
    %71 = vector.shape_cast %70 : vector<1x128x32xf32> to vector<128x32xf32>
    %cst_55 = arith.constant dense<0.000000e+00> : vector<32x32xf32>
    %72 = tpu.matmul %9, %71, %cst_55 {dimension_numbers = #tpu.dot_dimension_numbers<[1], [0], [0], [1], [0, 0, 1, 1], [], []>} : vector<32x128xf32>, vector<128x32xf32>, vector<32x32xf32> -> vector<32x32xf32>
    %c2_56 = arith.constant 2 : index
    %c0_57 = arith.constant 0 : index
    %c0_58 = arith.constant 0 : index
    %73 = vector.load %arg7[%c2_56, %c0_57, %c0_58] : memref<4x128x32xf32, #tpu.memory_space<vmem>>, vector<1x128x32xf32>
    %74 = vector.shape_cast %73 : vector<1x128x32xf32> to vector<128x32xf32>
    %cst_59 = arith.constant dense<0.000000e+00> : vector<32x32xf32>
    %75 = tpu.matmul %6, %74, %cst_59 {dimension_numbers = #tpu.dot_dimension_numbers<[1], [0], [0], [1], [0, 0, 1, 1], [], []>} : vector<32x128xf32>, vector<128x32xf32>, vector<32x32xf32> -> vector<32x32xf32>
    %76 = vector.shape_cast %69 : vector<32x32xf32> to vector<2x16x32xf32>
    %77 = vector.shape_cast %72 : vector<32x32xf32> to vector<2x16x32xf32>
    %78 = vector.shape_cast %75 : vector<32x32xf32> to vector<2x16x32xf32>
    "tpu.trace_start"() <{level = 10 : i32, message = "bld,bsd->bls"}> : () -> ()
    %cst_60 = arith.constant dense<0.000000e+00> : vector<2x16x16xf32>
    %79 = tpu.matmul %76, %77, %cst_60 {dimension_numbers = #tpu.dot_dimension_numbers<[2], [2], [1], [1], [0, 0, 0, 1, 1, 1], [0], [0]>} : vector<2x16x32xf32>, vector<2x16x32xf32>, vector<2x16x16xf32> -> vector<2x16x16xf32>
    "tpu.trace_stop"() : () -> ()
    %cst_61 = arith.constant dense<0xFF800000> : vector<2x16xf32>
    %80 = vector.multi_reduction <maximumf>, %79, %cst_61 [2] : vector<2x16x16xf32> to vector<2x16xf32>
    %81 = vector.shape_cast %80 : vector<2x16xf32> to vector<2x16x1xf32>
    %82 = vector.broadcast %81 : vector<2x16x1xf32> to vector<2x16x16xf32>
    %83 = arith.subf %79, %82 : vector<2x16x16xf32>
    %84 = math.exp %83 : vector<2x16x16xf32>
    %cst_62 = arith.constant dense<0.000000e+00> : vector<2x16xf32>
    %85 = vector.multi_reduction <add>, %84, %cst_62 [2] : vector<2x16x16xf32> to vector<2x16xf32>
    %86 = vector.shape_cast %85 : vector<2x16xf32> to vector<2x16x1xf32>
    %87 = tpu.reciprocal %86 {approx = true} : vector<2x16x1xf32> -> vector<2x16x1xf32>
    %88 = vector.broadcast %87 : vector<2x16x1xf32> to vector<2x16x16xf32>
    %89 = arith.mulf %84, %88 : vector<2x16x16xf32>
    "tpu.trace_start"() <{level = 10 : i32, message = "bls,bsd->bld"}> : () -> ()
    %cst_63 = arith.constant dense<0.000000e+00> : vector<2x16x32xf32>
    %90 = tpu.matmul %89, %78, %cst_63 {dimension_numbers = #tpu.dot_dimension_numbers<[2], [1], [1], [2], [0, 0, 0, 1, 1, 2], [0], [0]>} : vector<2x16x16xf32>, vector<2x16x32xf32>, vector<2x16x32xf32> -> vector<2x16x32xf32>
    "tpu.trace_stop"() : () -> ()
    %91 = vector.shape_cast %90 : vector<2x16x32xf32> to vector<32x32xf32>
    %c2_64 = arith.constant 2 : index
    %c0_65 = arith.constant 0 : index
    %c0_66 = arith.constant 0 : index
    %92 = vector.load %arg8[%c2_64, %c0_65, %c0_66] : memref<4x32x128xf32, #tpu.memory_space<vmem>>, vector<1x32x128xf32>
    %93 = vector.shape_cast %92 : vector<1x32x128xf32> to vector<32x128xf32>
    %cst_67 = arith.constant dense<0.000000e+00> : vector<32x128xf32>
    %94 = tpu.matmul %91, %93, %cst_67 {dimension_numbers = #tpu.dot_dimension_numbers<[1], [0], [0], [1], [0, 0, 1, 1], [], []>} : vector<32x32xf32>, vector<32x128xf32>, vector<32x128xf32> -> vector<32x128xf32>
    %95 = arith.addf %66, %94 : vector<32x128xf32>
    %c3 = arith.constant 3 : index
    %c0_68 = arith.constant 0 : index
    %c0_69 = arith.constant 0 : index
    %96 = vector.load %arg5[%c3, %c0_68, %c0_69] : memref<4x128x32xf32, #tpu.memory_space<vmem>>, vector<1x128x32xf32>
    %97 = vector.shape_cast %96 : vector<1x128x32xf32> to vector<128x32xf32>
    %cst_70 = arith.constant dense<0.000000e+00> : vector<32x32xf32>
    %98 = tpu.matmul %4, %97, %cst_70 {dimension_numbers = #tpu.dot_dimension_numbers<[1], [0], [0], [1], [0, 0, 1, 1], [], []>} : vector<32x128xf32>, vector<128x32xf32>, vector<32x32xf32> -> vector<32x32xf32>
    %c3_71 = arith.constant 3 : index
    %c0_72 = arith.constant 0 : index
    %c0_73 = arith.constant 0 : index
    %99 = vector.load %arg6[%c3_71, %c0_72, %c0_73] : memref<4x128x32xf32, #tpu.memory_space<vmem>>, vector<1x128x32xf32>
    %100 = vector.shape_cast %99 : vector<1x128x32xf32> to vector<128x32xf32>
    %cst_74 = arith.constant dense<0.000000e+00> : vector<32x32xf32>
    %101 = tpu.matmul %9, %100, %cst_74 {dimension_numbers = #tpu.dot_dimension_numbers<[1], [0], [0], [1], [0, 0, 1, 1], [], []>} : vector<32x128xf32>, vector<128x32xf32>, vector<32x32xf32> -> vector<32x32xf32>
    %c3_75 = arith.constant 3 : index
    %c0_76 = arith.constant 0 : index
    %c0_77 = arith.constant 0 : index
    %102 = vector.load %arg7[%c3_75, %c0_76, %c0_77] : memref<4x128x32xf32, #tpu.memory_space<vmem>>, vector<1x128x32xf32>
    %103 = vector.shape_cast %102 : vector<1x128x32xf32> to vector<128x32xf32>
    %cst_78 = arith.constant dense<0.000000e+00> : vector<32x32xf32>
    %104 = tpu.matmul %6, %103, %cst_78 {dimension_numbers = #tpu.dot_dimension_numbers<[1], [0], [0], [1], [0, 0, 1, 1], [], []>} : vector<32x128xf32>, vector<128x32xf32>, vector<32x32xf32> -> vector<32x32xf32>
    %105 = vector.shape_cast %98 : vector<32x32xf32> to vector<2x16x32xf32>
    %106 = vector.shape_cast %101 : vector<32x32xf32> to vector<2x16x32xf32>
    %107 = vector.shape_cast %104 : vector<32x32xf32> to vector<2x16x32xf32>
    "tpu.trace_start"() <{level = 10 : i32, message = "bld,bsd->bls"}> : () -> ()
    %cst_79 = arith.constant dense<0.000000e+00> : vector<2x16x16xf32>
    %108 = tpu.matmul %105, %106, %cst_79 {dimension_numbers = #tpu.dot_dimension_numbers<[2], [2], [1], [1], [0, 0, 0, 1, 1, 1], [0], [0]>} : vector<2x16x32xf32>, vector<2x16x32xf32>, vector<2x16x16xf32> -> vector<2x16x16xf32>
    "tpu.trace_stop"() : () -> ()
    %cst_80 = arith.constant dense<0xFF800000> : vector<2x16xf32>
    %109 = vector.multi_reduction <maximumf>, %108, %cst_80 [2] : vector<2x16x16xf32> to vector<2x16xf32>
    %110 = vector.shape_cast %109 : vector<2x16xf32> to vector<2x16x1xf32>
    %111 = vector.broadcast %110 : vector<2x16x1xf32> to vector<2x16x16xf32>
    %112 = arith.subf %108, %111 : vector<2x16x16xf32>
    %113 = math.exp %112 : vector<2x16x16xf32>
    %cst_81 = arith.constant dense<0.000000e+00> : vector<2x16xf32>
    %114 = vector.multi_reduction <add>, %113, %cst_81 [2] : vector<2x16x16xf32> to vector<2x16xf32>
    %115 = vector.shape_cast %114 : vector<2x16xf32> to vector<2x16x1xf32>
    %116 = tpu.reciprocal %115 {approx = true} : vector<2x16x1xf32> -> vector<2x16x1xf32>
    %117 = vector.broadcast %116 : vector<2x16x1xf32> to vector<2x16x16xf32>
    %118 = arith.mulf %113, %117 : vector<2x16x16xf32>
    "tpu.trace_start"() <{level = 10 : i32, message = "bls,bsd->bld"}> : () -> ()
    %cst_82 = arith.constant dense<0.000000e+00> : vector<2x16x32xf32>
    %119 = tpu.matmul %118, %107, %cst_82 {dimension_numbers = #tpu.dot_dimension_numbers<[2], [1], [1], [2], [0, 0, 0, 1, 1, 2], [0], [0]>} : vector<2x16x16xf32>, vector<2x16x32xf32>, vector<2x16x32xf32> -> vector<2x16x32xf32>
    "tpu.trace_stop"() : () -> ()
    %120 = vector.shape_cast %119 : vector<2x16x32xf32> to vector<32x32xf32>
    %c3_83 = arith.constant 3 : index
    %c0_84 = arith.constant 0 : index
    %c0_85 = arith.constant 0 : index
    %121 = vector.load %arg8[%c3_83, %c0_84, %c0_85] : memref<4x32x128xf32, #tpu.memory_space<vmem>>, vector<1x32x128xf32>
    %122 = vector.shape_cast %121 : vector<1x32x128xf32> to vector<32x128xf32>
    %cst_86 = arith.constant dense<0.000000e+00> : vector<32x128xf32>
    %123 = tpu.matmul %120, %122, %cst_86 {dimension_numbers = #tpu.dot_dimension_numbers<[1], [0], [0], [1], [0, 0, 1, 1], [], []>} : vector<32x32xf32>, vector<32x128xf32>, vector<32x128xf32> -> vector<32x128xf32>
    %124 = arith.addf %95, %123 : vector<32x128xf32>
    %cst_87 = arith.constant dense<0.000000e+00> : vector<32xf32>
    %125 = vector.multi_reduction <add>, %124, %cst_87 [1] : vector<32x128xf32> to vector<32xf32>
    %126 = vector.shape_cast %125 : vector<32xf32> to vector<32x1xf32>
    %cst_88 = arith.constant 1.280000e+02 : f32
    %127 = vector.broadcast %cst_88 : f32 to vector<32x1xf32>
    %128 = arith.divf %126, %127 : vector<32x1xf32>
    %129 = vector.broadcast %128 : vector<32x1xf32> to vector<32x128xf32>
    %130 = arith.subf %124, %129 : vector<32x128xf32>
    %131 = arith.mulf %130, %130 : vector<32x128xf32>
    %cst_89 = arith.constant dense<0.000000e+00> : vector<32xf32>
    %132 = vector.multi_reduction <add>, %131, %cst_89 [1] : vector<32x128xf32> to vector<32xf32>
    %133 = vector.shape_cast %132 : vector<32xf32> to vector<32x1xf32>
    %cst_90 = arith.constant 1.280000e+02 : f32
    %134 = vector.broadcast %cst_90 : f32 to vector<32x1xf32>
    %135 = arith.divf %133, %134 : vector<32x1xf32>
    %136 = vector.broadcast %128 : vector<32x1xf32> to vector<32x128xf32>
    %137 = arith.subf %124, %136 : vector<32x128xf32>
    %cst_91 = arith.constant 9.99999974E-6 : f32
    %138 = vector.broadcast %cst_91 : f32 to vector<32x1xf32>
    %139 = arith.addf %135, %138 : vector<32x1xf32>
    %140 = math.rsqrt %139 : vector<32x1xf32>
    %141 = vector.broadcast %140 : vector<32x1xf32> to vector<32x128xf32>
    %142 = arith.mulf %137, %141 : vector<32x128xf32>
    %c0_92 = arith.constant 0 : index
    %c0_93 = arith.constant 0 : index
    %143 = vector.load %arg12[%c0_92, %c0_93] : memref<1x128xf32, #tpu.memory_space<vmem>>, vector<1x128xf32>
    %144 = vector.broadcast %143 : vector<1x128xf32> to vector<32x128xf32>
    %145 = arith.mulf %142, %144 : vector<32x128xf32>
    %c0_94 = arith.constant 0 : index
    %c0_95 = arith.constant 0 : index
    %146 = vector.load %arg13[%c0_94, %c0_95] : memref<1x128xf32, #tpu.memory_space<vmem>>, vector<1x128xf32>
    %147 = vector.broadcast %146 : vector<1x128xf32> to vector<32x128xf32>
    %148 = arith.addf %145, %147 : vector<32x128xf32>
    %c0_96 = arith.constant 0 : index
    %c0_97 = arith.constant 0 : index
    %149 = vector.load %arg9[%c0_96, %c0_97] : memref<128x256xf32, #tpu.memory_space<vmem>>, vector<128x256xf32>
    %cst_98 = arith.constant dense<0.000000e+00> : vector<32x256xf32>
    %150 = tpu.matmul %1, %149, %cst_98 {dimension_numbers = #tpu.dot_dimension_numbers<[1], [0], [0], [1], [0, 0, 1, 1], [], []>} : vector<32x128xf32>, vector<128x256xf32>, vector<32x256xf32> -> vector<32x256xf32>
    %c0_99 = arith.constant 0 : index
    %c0_100 = arith.constant 0 : index
    %151 = vector.load %arg10[%c0_99, %c0_100] : memref<128x256xf32, #tpu.memory_space<vmem>>, vector<128x256xf32>
    %cst_101 = arith.constant dense<0.000000e+00> : vector<32x256xf32>
    %152 = tpu.matmul %148, %151, %cst_101 {dimension_numbers = #tpu.dot_dimension_numbers<[1], [0], [0], [1], [0, 0, 1, 1], [], []>} : vector<32x128xf32>, vector<128x256xf32>, vector<32x256xf32> -> vector<32x256xf32>
    %153 = arith.addf %150, %152 : vector<32x256xf32>
    %cst_102 = arith.constant 0.000000e+00 : f32
    %154 = vector.broadcast %cst_102 : f32 to vector<32x256xf32>
    %155 = arith.maximumf %153, %154 : vector<32x256xf32>
    %c0_103 = arith.constant 0 : index
    %c0_104 = arith.constant 0 : index
    %156 = vector.load %arg11[%c0_103, %c0_104] : memref<256x128xf32, #tpu.memory_space<vmem>>, vector<256x128xf32>
    %cst_105 = arith.constant dense<0.000000e+00> : vector<32x128xf32>
    %157 = tpu.matmul %155, %156, %cst_105 {dimension_numbers = #tpu.dot_dimension_numbers<[1], [0], [0], [1], [0, 0, 1, 1], [], []>} : vector<32x256xf32>, vector<256x128xf32>, vector<32x128xf32> -> vector<32x128xf32>
    %cst_106 = arith.constant dense<0.000000e+00> : vector<32xf32>
    %158 = vector.multi_reduction <add>, %157, %cst_106 [1] : vector<32x128xf32> to vector<32xf32>
    %159 = vector.shape_cast %158 : vector<32xf32> to vector<32x1xf32>
    %cst_107 = arith.constant 1.280000e+02 : f32
    %160 = vector.broadcast %cst_107 : f32 to vector<32x1xf32>
    %161 = arith.divf %159, %160 : vector<32x1xf32>
    %162 = vector.broadcast %161 : vector<32x1xf32> to vector<32x128xf32>
    %163 = arith.subf %157, %162 : vector<32x128xf32>
    %164 = arith.mulf %163, %163 : vector<32x128xf32>
    %cst_108 = arith.constant dense<0.000000e+00> : vector<32xf32>
    %165 = vector.multi_reduction <add>, %164, %cst_108 [1] : vector<32x128xf32> to vector<32xf32>
    %166 = vector.shape_cast %165 : vector<32xf32> to vector<32x1xf32>
    %cst_109 = arith.constant 1.280000e+02 : f32
    %167 = vector.broadcast %cst_109 : f32 to vector<32x1xf32>
    %168 = arith.divf %166, %167 : vector<32x1xf32>
    %169 = vector.broadcast %161 : vector<32x1xf32> to vector<32x128xf32>
    %170 = arith.subf %157, %169 : vector<32x128xf32>
    %cst_110 = arith.constant 9.99999974E-6 : f32
    %171 = vector.broadcast %cst_110 : f32 to vector<32x1xf32>
    %172 = arith.addf %168, %171 : vector<32x1xf32>
    %173 = math.rsqrt %172 : vector<32x1xf32>
    %174 = vector.broadcast %173 : vector<32x1xf32> to vector<32x128xf32>
    %175 = arith.mulf %170, %174 : vector<32x128xf32>
    %c0_111 = arith.constant 0 : index
    %c0_112 = arith.constant 0 : index
    %176 = vector.load %arg14[%c0_111, %c0_112] : memref<1x128xf32, #tpu.memory_space<vmem>>, vector<1x128xf32>
    %177 = vector.broadcast %176 : vector<1x128xf32> to vector<32x128xf32>
    %178 = arith.mulf %175, %177 : vector<32x128xf32>
    %c0_113 = arith.constant 0 : index
    %c0_114 = arith.constant 0 : index
    %179 = vector.load %arg15[%c0_113, %c0_114] : memref<1x128xf32, #tpu.memory_space<vmem>>, vector<1x128xf32>
    %180 = vector.broadcast %179 : vector<1x128xf32> to vector<32x128xf32>
    %181 = arith.addf %178, %180 : vector<32x128xf32>
    %182 = arith.addf %1, %181 : vector<32x128xf32>
    %183 = vector.shape_cast %182 : vector<32x128xf32> to vector<2x16x128xf32>
    %c0_115 = arith.constant 0 : index
    %c0_116 = arith.constant 0 : index
    %c0_117 = arith.constant 0 : index
    %184 = vector.load %arg16[%c0_115, %c0_116, %c0_117] : memref<2x16x128xf32, #tpu.memory_space<vmem>>, vector<2x16x128xf32>
    tpu.vector_store %arg16[%c0_115, %c0_116, %c0_117], %183 {strides = array<i32>} : memref<2x16x128xf32, #tpu.memory_space<vmem>>, vector<2x16x128xf32>,
    return
  }
  func.func @transform_0(%arg0: i32) -> (i32, i32, i32) {
    %c0_i32 = arith.constant 0 : i32
    %c0_i32_0 = arith.constant 0 : i32
    %c0_i32_1 = arith.constant 0 : i32
    return %arg0, %c0_i32, %c0_i32_0 : i32, i32, i32
  }
  func.func @transform_1(%arg0: i32) -> (i32, i32, i32) {
    %c0_i32 = arith.constant 0 : i32
    %c0_i32_0 = arith.constant 0 : i32
    %c0_i32_1 = arith.constant 0 : i32
    return %arg0, %c0_i32, %c0_i32_0 : i32, i32, i32
  }
  func.func @transform_2(%arg0: i32) -> (i32, i32, i32) {
    %c0_i32 = arith.constant 0 : i32
    %c0_i32_0 = arith.constant 0 : i32
    %c0_i32_1 = arith.constant 0 : i32
    return %arg0, %c0_i32, %c0_i32_0 : i32, i32, i32
  }
  func.func @transform_3(%arg0: i32) -> (i32, i32, i32) {
    %c0_i32 = arith.constant 0 : i32
    %c0_i32_0 = arith.constant 0 : i32
    %c0_i32_1 = arith.constant 0 : i32
    return %arg0, %c0_i32, %c0_i32_0 : i32, i32, i32
  }
  func.func @transform_4(%arg0: i32) -> (i32, i32, i32) {
    %c0_i32 = arith.constant 0 : i32
    %c0_i32_0 = arith.constant 0 : i32
    %c0_i32_1 = arith.constant 0 : i32
    %c0_i32_2 = arith.constant 0 : i32
    return %c0_i32, %c0_i32_0, %c0_i32_1 : i32, i32, i32
  }
  func.func @transform_5(%arg0: i32) -> (i32, i32, i32) {
    %c0_i32 = arith.constant 0 : i32
    %c0_i32_0 = arith.constant 0 : i32
    %c0_i32_1 = arith.constant 0 : i32
    %c0_i32_2 = arith.constant 0 : i32
    return %c0_i32, %c0_i32_0, %c0_i32_1 : i32, i32, i32
  }
  func.func @transform_6(%arg0: i32) -> (i32, i32, i32) {
    %c0_i32 = arith.constant 0 : i32
    %c0_i32_0 = arith.constant 0 : i32
    %c0_i32_1 = arith.constant 0 : i32
    %c0_i32_2 = arith.constant 0 : i32
    return %c0_i32, %c0_i32_0, %c0_i32_1 : i32, i32, i32
  }
  func.func @transform_7(%arg0: i32) -> (i32, i32, i32) {
    %c0_i32 = arith.constant 0 : i32
    %c0_i32_0 = arith.constant 0 : i32
    %c0_i32_1 = arith.constant 0 : i32
    %c0_i32_2 = arith.constant 0 : i32
    return %c0_i32, %c0_i32_0, %c0_i32_1 : i32, i32, i32
  }
  func.func @transform_8(%arg0: i32) -> (i32, i32) {
    %c0_i32 = arith.constant 0 : i32
    %c0_i32_0 = arith.constant 0 : i32
    %c0_i32_1 = arith.constant 0 : i32
    return %c0_i32, %c0_i32_0 : i32, i32
  }
  func.func @transform_9(%arg0: i32) -> (i32, i32) {
    %c0_i32 = arith.constant 0 : i32
    %c0_i32_0 = arith.constant 0 : i32
    %c0_i32_1 = arith.constant 0 : i32
    return %c0_i32, %c0_i32_0 : i32, i32
  }
  func.func @transform_10(%arg0: i32) -> (i32, i32) {
    %c0_i32 = arith.constant 0 : i32
    %c0_i32_0 = arith.constant 0 : i32
    %c0_i32_1 = arith.constant 0 : i32
    return %c0_i32, %c0_i32_0 : i32, i32
  }
  func.func @transform_11(%arg0: i32) -> (i32, i32) {
    %c0_i32 = arith.constant 0 : i32
    %c0_i32_0 = arith.constant 0 : i32
    %c0_i32_1 = arith.constant 0 : i32
    return %c0_i32, %c0_i32_0 : i32, i32
  }
  func.func @transform_12(%arg0: i32) -> (i32, i32) {
    %c0_i32 = arith.constant 0 : i32
    %c0_i32_0 = arith.constant 0 : i32
    %c0_i32_1 = arith.constant 0 : i32
    return %c0_i32, %c0_i32_0 : i32, i32
  }
  func.func @transform_13(%arg0: i32) -> (i32, i32) {
    %c0_i32 = arith.constant 0 : i32
    %c0_i32_0 = arith.constant 0 : i32
    %c0_i32_1 = arith.constant 0 : i32
    return %c0_i32, %c0_i32_0 : i32, i32
  }
  func.func @transform_14(%arg0: i32) -> (i32, i32) {
    %c0_i32 = arith.constant 0 : i32
    %c0_i32_0 = arith.constant 0 : i32
    %c0_i32_1 = arith.constant 0 : i32
    return %c0_i32, %c0_i32_0 : i32, i32
  }
  func.func @transform_15(%arg0: i32) -> (i32, i32, i32) {
    %c0_i32 = arith.constant 0 : i32
    %c0_i32_0 = arith.constant 0 : i32
    %c0_i32_1 = arith.constant 0 : i32
    return %arg0, %c0_i32, %c0_i32_0 : i32, i32, i32
  }
}

</mosaic_0001>

<bundles_post_ra>
// kernel: tpu_custom_call.1
= control target key start
LH: loop header
LB: loop body
LE: loop exit
PB: predicated region body
PF: predicated region fallthrough
CT: control target
= control target key end

     0   :  { %s7870_s0 = inlined_call_operand.vmem [shape: f32[4,16,128], index: 0, kind: input, shape index: {}]   ;;  %s7871_s1 = inlined_call_operand.vmem [shape: f32[4,16,128], index: 1, kind: input, shape index: {}]   ;;  %s7872_s2 = inlined_call_operand.vmem [shape: f32[4,16,128], index: 2, kind: input, shape index: {}]   ;;  %s7873_s3 = inlined_call_operand.vmem [shape: f32[4,16,128], index: 3, kind: input, shape index: {}]   ;;  %s7874_s4 = inlined_call_operand.vmem [shape: f32[4,128,32], index: 4, kind: input, shape index: {}]   ;;  %s7875_s5 = inlined_call_operand.vmem [shape: f32[4,128,32], index: 5, kind: input, shape index: {}]   ;;  %s7876_s6 = inlined_call_operand.vmem [shape: f32[4,128,32], index: 6, kind: input, shape index: {}]   ;;  %s7877_s7 = inlined_call_operand.vmem [shape: f32[4,32,128], index: 7, kind: input, shape index: {}]   ;;  %s7878_s8 = inlined_call_operand.vmem [shape: f32[128,256], index: 8, kind: input, shape index: {}]   ;;  %s7879_s9 = inlined_call_operand.vmem [shape: f32[128,256], index: 9, kind: input, shape index: {}]   ;;  %s7880_s10 = inlined_call_operand.vmem [shape: f32[256,128], index: 10, kind: input, shape index: {}]   ;;  %s7881_s11 = inlined_call_operand.vmem [shape: f32[1,128], index: 11, kind: input, shape index: {}]   ;;  %s7882_s12 = inlined_call_operand.vmem [shape: f32[1,128], index: 12, kind: input, shape index: {}]   ;;  %s7883_s13 = inlined_call_operand.vmem [shape: f32[1,128], index: 13, kind: input, shape index: {}]   ;;  %s7884_s14 = inlined_call_operand.vmem [shape: f32[1,128], index: 14, kind: input, shape index: {}]   ;;  %s7885_s15 = inlined_call_operand.hbm [shape: f32[4,16,128], index: 15, kind: output, shape index: {}]  }
   0x1   :  { %7893 = sst [smem:[#allocation11_spill]] %s7885_s15 }
   0x2   :  { %20 = vsyncpa [#allocation3], 0 }
   0x3   :  { %22 = vsyncpa [#allocation3 + $0x1], 0  ;;  %s6524_s18 = smov 0   ;;  %s6526_s19 = smov 0  }
   0x4   :  { %s6528_s20 = smov 0   ;;  %s6530_s21 = smov 0  }
   0x5 LB: > { %7894 = sst [smem:[#allocation5_spill]] %s6426_s18  ;;  %s6545_s22 = sadd.s32 4294967295, %s6438_s21   ;;  %s6438_s21 = sphi %s6530_s21, %s7908_s21   ;;  %s6434_s20 = sphi %s6528_s20, %s7910_s20   ;;  %s6430_s19 = sphi %s6526_s19, %s7912_s19   ;;  %s6426_s18 = sphi %s6524_s18, %s7911_s18  }
   0x6   : > { %7895 = sst [smem:[#allocation6_spill]] %s6434_s20  ;;  %s4377_s23 = sadd.s32 4294967294, %s6438_s21  }
   0x7   : > { %7896 = sst [smem:[#allocation7_spill]] %s6438_s21  ;;  %s6549_s24 = sadd.s32 1, %s6438_s21  }
   0x8   : > { %7897 = sst [smem:[#allocation8_spill]] %s6549_s24  ;;  %s370_s25 = sadd.s32 1, %s6434_s20 }
   0x9   : > { %s367_s26 = ssub.s32 %s6438_s21, %s6549_s24  ;;  %p380_p0 = scmp.ne.s32.totalorder %s6434_s20, %s6430_s19 }
   0xa   : > { %p368_p1 = scmp.eq.s32.totalorder %s367_s26, 0  ;;  %p381_p2 = scmp.eq.s32.totalorder %s6545_s22, 1 }
   0xb   : > { %p386_p3 = scmp.ne.s32.totalorder %s6430_s19, %s6426_s18  ;;  %p387_p4 = scmp.eq.s32.totalorder %s4377_s23, 1 }
   0xc   : > { %s6560_s27 = scalar_select %p368_p1, %s6434_s20, %s370_s25  }
   0xd   : > { %p6562_p5 = por %p381_p2, %p380_p0  ;;  %p6566_p6 = por %p387_p4, %p386_p3 }
   0xe   : > { %7898 = sst [smem:[#allocation9_spill]] %s6560_s27  ;;  %p4380_p7 = scmp.ge.s32.totalorder %s6438_s21, 1 }
   0xf   : > { %s7900_s29 = scalar_select %p6566_p6, 1, 0 }
  0x10   : > { %p478_p8 = scmp.lt.s32.totalorder %s6438_s21, 3 }
  0x11   : > { %7901 = sst [smem:[#allocation10_spill]] %s7900_s29 }
  0x12   : > { %p479_p9 = pnand %p4380_p7, %p478_p8 }
  0x13   : > { %v699_v0 = vld [vmem:[%s7875_s5] sm:$0xff] (!%p479_p9)  ;;  %v700_v1 = vld [vmem:[%s7875_s5 + $0x8] sm:$0xff] (!%p479_p9)  ;;  %v701_v2 = vld [vmem:[%s7875_s5 + $0x10] sm:$0xff] (!%p479_p9)  ;;  %s4382_s27 = sshll.u32 (!%p479_p9), %s6545_s22, 1  ;;  %vm901_vm0 = vcmask (!%p479_p9), 261120   ;;  %vm1076_vm2 = vcmask (!%p479_p9), 130048  }
  0x14   : > { %482 = sbr.rel (%p479_p9) target bundleno = 5134 (0x140e), region = 80  ;;  %v5666_v3 = vpack.c.bf16 (!%p479_p9), %v700_v1, %v699_v0  ;;  %v702_v4 = vld [vmem:[%s7875_s5 + $0x18] sm:$0xff] (!%p479_p9)  ;;  %v598_v5 = vld [vmem:[%s7874_s4] sm:$0xff] (!%p479_p9)  ;;  %v599_v6 = vld [vmem:[%s7874_s4 + $0x8] sm:$0xff] (!%p479_p9)  ;;  %p546_p10 = scmp.lt.s32.totalorder (!%p479_p9), %s4382_s27, 3 }
  0x15   : > { %v5670_v7 = vpack.c.bf16 (!%p479_p9), %v702_v4, %v701_v2  ;;  %v5634_v8 = vpack.c.bf16 (!%p479_p9), %v599_v6, %v598_v5  ;;  %v703_v9 = vld [vmem:[%s7875_s5 + $0x20] sm:$0xff] (!%p479_p9)  ;;  %v704_v10 = vld [vmem:[%s7875_s5 + $0x28] sm:$0xff] (!%p479_p9)  ;;  %v600_v11 = vld [vmem:[%s7874_s4 + $0x10] sm:$0xff] (!%p479_p9)  ;;  %s542_s29 = sand.u32 (!%p479_p9), 1, %s6430_s19   ;;  %s4629_s21 = sshll.u32 (!%p479_p9), %s6545_s22, 9 }
  0x16   : > { %5667 = vmatprep.subr.bf16.mxu1 (!%p479_p9), %v5666_v3  ;;  %v601_v12 = vld [vmem:[%s7874_s4 + $0x18] sm:$0xff] (!%p479_p9)  ;;  %v602_v14 = vld [vmem:[%s7874_s4 + $0x20] sm:$0xff] (!%p479_p9)  ;;  %v603_v15 = vld [vmem:[%s7874_s4 + $0x28] sm:$0xff] (!%p479_p9)  ;;  %v5674_v16 = vpack.c.bf16 (!%p479_p9), %v704_v10, %v703_v9  ;;  %s4381_s15 = sshll.u32 (!%p479_p9), %s542_s29, 5  ;;  %s7904_s26 = sld [smem:[#allocation11_spill]] (!%p479_p9) }
  0x17   : > { %5669 = vmatpush3.bf16.msra.mxu1 (!%p479_p9), %v5666_v3  ;;  %5635 = vmatprep.subr.bf16.mxu0 (!%p479_p9), %v5634_v8  ;;  %v5638_v13 = vpack.c.bf16 (!%p479_p9), %v601_v12, %v600_v11  ;;  %v705_v17 = vld [vmem:[%s7875_s5 + $0x30] sm:$0xff] (!%p479_p9)  ;;  %v706_v18 = vld [vmem:[%s7875_s5 + $0x38] sm:$0xff] (!%p479_p9)  ;;  %v5642_v19 = vpack.c.bf16 (!%p479_p9), %v603_v15, %v602_v14  ;;  %v707_v25 = vld [vmem:[%s7875_s5 + $0x40] sm:$0xff] (!%p479_p9)  ;;  %s6441_s18 = smov (!%p479_p9), [#allocation2]  }
  0x18   : > { %5671 = vmatprep.subr.bf16.mxu1 (!%p479_p9), %v5670_v7  ;;  %5637 = vmatpush3.bf16.msra.mxu0 (!%p479_p9), %v5634_v8  ;;  %v604_v20 = vld [vmem:[%s7874_s4 + $0x30] sm:$0xff] (!%p479_p9)  ;;  %v605_v21 = vld [vmem:[%s7874_s4 + $0x38] sm:$0xff] (!%p479_p9)  ;;  %v5678_v22 = vpack.c.bf16 (!%p479_p9), %v706_v18, %v705_v17  ;;  %v708_v26 = vld [vmem:[%s7875_s5 + $0x48] sm:$0xff] (!%p479_p9) }
  0x19   : > { %5639 = vmatprep.subr.bf16.mxu0 (!%p479_p9), %v5638_v13  ;;  %v5646_v27 = vpack.c.bf16 (!%p479_p9), %v605_v21, %v604_v20  ;;  %v606_v29 = vld [vmem:[%s7874_s4 + $0x40] sm:$0xff] (!%p479_p9)  ;;  %v607_v30 = vld [vmem:[%s7874_s4 + $0x48] sm:$0xff] (!%p479_p9)  ;;  %v5682_v31 = vpack.c.bf16 (!%p479_p9), %v708_v26, %v707_v25  ;;  %v709_v34 = vld [vmem:[%s7875_s5 + $0x50] sm:$0xff] (!%p479_p9) }
  0x1a   : > { %v710_v35 = vld [vmem:[%s7875_s5 + $0x58] sm:$0xff] (!%p479_p9)  ;;  %v5650_v36 = vpack.c.bf16 (!%p479_p9), %v607_v30, %v606_v29  ;;  %v608_v38 = vld [vmem:[%s7874_s4 + $0x50] sm:$0xff] (!%p479_p9)  ;;  %v711_v41 = vld [vmem:[%s7875_s5 + $0x60] sm:$0xff] (!%p479_p9) }
  0x1b   : > { %s7914_s27 = smov (!%p546_p10, %s4382_s27), 3  ;;  %5673 = vmatpush3.bf16.msra.mxu1 %v5670_v7  ;;  %v609_v39 = vld [vmem:[%s7874_s4 + $0x58] sm:$0xff]  ;;  %v5686_v40 = vpack.c.bf16 %v710_v35, %v709_v34  ;;  %v712_v42 = vld [vmem:[%s7875_s5 + $0x68] sm:$0xff]  ;;  %v610_v44 = vld [vmem:[%s7874_s4 + $0x60] sm:$0xff] }
  0x1c   : > { %s4624_s25 = sshll.u32 %s7914_s27, 4  ;;  %5675 = vmatprep.subr.bf16.mxu1 %v5674_v16  ;;  %5641 = vmatpush3.bf16.msra.mxu0 %v5638_v13  ;;  %v5654_v43 = vpack.c.bf16 %v609_v39, %v608_v38  ;;  %v611_v45 = vld [vmem:[%s7874_s4 + $0x68] sm:$0xff]  ;;  %v5690_v46 = vpack.c.bf16 %v712_v42, %v711_v41  ;;  %v713_v47 = vld [vmem:[%s7875_s5 + $0x70] sm:$0xff]  ;;  %v714_v48 = vld [vmem:[%s7875_s5 + $0x78] sm:$0xff]  ;;  %s7822_s24 = scalar_lea.hbm %s7904_s26, %s4629_s21 }
  0x1d   : > { %s6618_s16 = scalar_lea.vmem %s7871_s1, %s4624_s25  ;;  %s6623_s27 = scalar_lea.vmem %s7873_s3, %s4624_s25  ;;  %5643 = vmatprep.subr.bf16.mxu0 %v5642_v19  ;;  %v5658_v49 = vpack.c.bf16 %v611_v45, %v610_v44  ;;  %v612_v50 = vld [vmem:[%s7874_s4 + $0x70] sm:$0xff]  ;;  %v613_v51 = vld [vmem:[%s7874_s4 + $0x78] sm:$0xff]  ;;  %v5694_v52 = vpack.c.bf16 %v714_v48, %v713_v47  ;;  %v800_v54 = vld [vmem:[%s7876_s6] sm:$0xff] }
  0x1e   : > { %v6632_v23 = vld [vmem:[%s6618_s16] sm:$0xff]  ;;  %s6647_s17 = scalar_lea.vmem %s7870_s0, %s4624_s25  ;;  %s6652_s20 = scalar_lea.vmem %s7872_s2, %s4624_s25  ;;  %v5662_v53 = vpack.c.bf16 %v613_v51, %v612_v50  ;;  %v801_v55 = vld [vmem:[%s7876_s6 + $0x8] sm:$0xff]  ;;  %v6713_v58 = vld [vmem:[%s6618_s16 + $0x10] sm:$0xff] }
  0x1f   : > { %v590_v24 = vld [vmem:[%s6623_s27] sm:$0xff]  ;;  %5677 = vmatpush3.bf16.msra.mxu1 %v5674_v16  ;;  %v6709_v56 = vld [vmem:[%s6618_s16 + $0x8] sm:$0xff]  ;;  %v592_v59 = vld [vmem:[%s6623_s27 + $0x10] sm:$0xff]  ;;  %v5698_v0 = vpack.c.bf16 %v801_v55, %v800_v54  ;;  %s544_s25 = scalar_lea.vmem [#allocation2], %s4381_s15 }
  0x20   : > { %v6642_v28 = vadd.f32 %v590_v24, %v6632_v23  ;;  %5679 = vmatprep.subr.bf16.mxu1 %v5678_v22  ;;  %5645 = vmatpush3.bf16.msra.mxu0 %v5642_v19  ;;  %v574_v32 = vld [vmem:[%s6647_s17] sm:$0xff]  ;;  %v591_v57 = vld [vmem:[%s6623_s27 + $0x8] sm:$0xff]  ;;  %v576_v62 = vld [vmem:[%s6647_s17 + $0x10] sm:$0xff]  ;;  %v6730_v4 = vadd.f32 %v592_v59, %v6713_v58 }
  0x21   : > { %v578_v33 = vld [vmem:[%s6652_s20] sm:$0xff]  ;;  %5647 = vmatprep.subr.bf16.mxu0 %v5646_v27  ;;  %v575_v60 = vld [vmem:[%s6647_s17 + $0x8] sm:$0xff]  ;;  %v580_v63 = vld [vmem:[%s6652_s20 + $0x10] sm:$0xff]  ;;  %v6721_v1 = vadd.f32 %v591_v57, %v6709_v56 }
  0x22   : > { %5080 = vmatprep.mubr.f32.mxu1 %v6642_v28  ;;  %v6669_v37 = vadd.f32 %v578_v33, %v574_v32  ;;  %v579_v61 = vld [vmem:[%s6652_s20 + $0x8] sm:$0xff]  ;;  %v802_v2 = vld [vmem:[%s7876_s6 + $0x10] sm:$0xff]  ;;  %v803_v3 = vld [vmem:[%s7876_s6 + $0x18] sm:$0xff]  ;;  %v6738_v8 = vadd.f32 %v580_v63, %v576_v62 }
  0x23   : > { %5681 = vmatpush3.bf16.msra.mxu1 %v5678_v22  ;;  %v6733_v5 = vld [vmem:[%s6618_s16 + $0x18] sm:$0xff]  ;;  %v6736_v7 = vadd.f32 %v579_v61, %v575_v60  ;;  %v5702_v11 = vpack.c.bf16 %v803_v3, %v802_v2  ;;  %v804_v13 = vld [vmem:[%s7876_s6 + $0x20] sm:$0xff]  ;;  %v805_v14 = vld [vmem:[%s7876_s6 + $0x28] sm:$0xff] }
  0x24   : > { %5042 = vmatprep.mubr.f32.mxu0 %v6669_v37  ;;  %5683 = vmatprep.subr.bf16.mxu1 %v5682_v31  ;;  %v593_v6 = vld [vmem:[%s6623_s27 + $0x18] sm:$0xff]  ;;  %v5706_v16 = vpack.c.bf16 %v805_v14, %v804_v13  ;;  %v806_v17 = vld [vmem:[%s7876_s6 + $0x30] sm:$0xff]  ;;  %v808_v20 = vld [vmem:[%s7876_s6 + $0x40] sm:$0xff]  ;;  %s6380_s27 = sshll.u32 %s6441_s18, 4  ;;  %s6381_s27 = int_to_ptr.vmem [resolvable:$false] %s6380_s27 }
  0x25   : > { %5649 = vmatpush3.bf16.msra.mxu0 %v5646_v27  ;;  %v577_v9 = vld [vmem:[%s6647_s17 + $0x18] sm:$0xff]  ;;  %v6744_v12 = vadd.f32 %v593_v6, %v6733_v5  ;;  %v809_v21 = vld [vmem:[%s7876_s6 + $0x48] sm:$0xff]  ;;  %v810_v24 = vld [vmem:[%s7876_s6 + $0x50] sm:$0xff] }
  0x26   : > { %5651 = vmatprep.subr.bf16.mxu0 %v5650_v36  ;;  %v581_v10 = vld [vmem:[%s6652_s20 + $0x18] sm:$0xff]  ;;  %v5714_v22 = vpack.c.bf16 %v809_v21, %v808_v20  ;;  %v812_v27 = vld [vmem:[%s7876_s6 + $0x60] sm:$0xff]  ;;  %v813_v29 = vld [vmem:[%s7876_s6 + $0x68] sm:$0xff]  ;;  %s6382_s20 = scalar_lea.vmem %s6381_s27, 1024 }
  0x27   : > { %5685 = vmatpush3.bf16.msra.mxu1 %v5682_v31  ;;  %v6754_v15 = vadd.f32 %v581_v10, %v577_v9  ;;  %v807_v18 = vld [vmem:[%s7876_s6 + $0x38] sm:$0xff]  ;;  %v5722_v30 = vpack.c.bf16 %v813_v29, %v812_v27  ;;  %v814_v31 = vld [vmem:[%s7876_s6 + $0x70] sm:$0xff]  ;;  %vm6795_vm1 = vmpackc.low %vm901_vm0, %vm901_vm0 }
  0x28   : > { %5687 = vmatprep.subr.bf16.mxu1 %v5686_v40  ;;  %v5710_v19 = vpack.c.bf16 %v807_v18, %v806_v17  ;;  %v811_v25 = vld [vmem:[%s7876_s6 + $0x58] sm:$0xff]  ;;  %v4423_v27 = vld [vmem:[%s7875_s5 + $0x88] sm:$0xff] }
  0x29   : > { %5653 = vmatpush3.bf16.msra.mxu0 %v5650_v36  ;;  %v5718_v26 = vpack.c.bf16 %v811_v25, %v810_v24  ;;  %v815_v32 = vld [vmem:[%s7876_s6 + $0x78] sm:$0xff] }
  0x2a   : > { %5655 = vmatprep.subr.bf16.mxu0 %v5654_v43  ;;  %v5726_v33 = vpack.c.bf16 %v815_v32, %v814_v31  ;;  %v4425_v31 = vld [vmem:[%s7875_s5 + $0x98] sm:$0xff] }
  0x2b   : > { %5689 = vmatpush3.bf16.msra.mxu1 %v5686_v40  ;;  %v4581_v36 = vld [vmem:[%s7876_s6 + $0x198] sm:$0xff] }
  0x2c   : > { %5691 = vmatprep.subr.bf16.mxu1 %v5690_v46 }
  0x2d   : > { %5657 = vmatpush3.bf16.msra.mxu0 %v5654_v43 }
  0x2e   : > { %5659 = vmatprep.subr.bf16.mxu0 %v5658_v49 }
  0x2f   : > { %5693 = vmatpush3.bf16.msra.mxu1 %v5690_v46 }
  0x30   : > { %5695 = vmatprep.subr.bf16.mxu1 %v5694_v52 }
  0x31   : > { %5661 = vmatpush3.bf16.msra.mxu0 %v5658_v49 }
  0x32   : > { %5663 = vmatprep.subr.bf16.mxu0 %v5662_v53 }
  0x33   : > { %5697 = vmatpush3.bf16.msra.mxu1 %v5694_v52 }
  0x35   : > { %5665 = vmatpush3.bf16.msra.mxu0 %v5662_v53 }
  0x36   : > { %5699 = vmatprep.subr.bf16.mxu0 %v5698_v0  ;;  %5081 = vmatmul.mubr.f32.vlgmr.msra.gmra.mrb[0].mxu1 %v6721_v1 }
  0x37   : > { %5083 = vmatprep.mubr.f32.mxu1 %v6730_v4 }
  0x38   : > { %5043 = vmatmul.mubr.f32.vlgmr.msra.gmra.mrb[0].mxu0 %v6736_v7 }
  0x39   : > { %5045 = vmatprep.mubr.f32.mxu0 %v6738_v8  ;;  %5701 = vmatpush3.bf16.msra.mxu0 %v5698_v0 }
  0x3a   : > { %5703 = vmatprep.subr.bf16.mxu0 %v5702_v11  ;;  %5084 = vmatmul.mubr.f32.gmra.mrb[2].mxu1 %v6744_v12 }
  0x3c   : > { %5046 = vmatmul.mubr.f32.gmra.mrb[2].mxu0 %v6754_v15 }
  0x3d   : > { %5705 = vmatpush3.bf16.msra.mxu0 %v5702_v11  ;;  %5118 = vmatprep.mubr.f32.mxu0 %v6632_v23 }
  0x3e   : > { %5707 = vmatprep.subr.bf16.mxu0 %v5706_v16 }
  0x41   : > { %5709 = vmatpush3.bf16.msra.mxu0 %v5706_v16 }
  0x42   : > { %5711 = vmatprep.subr.bf16.mxu0 %v5710_v19 }
  0x45   : > { %5713 = vmatpush3.bf16.msra.mxu0 %v5710_v19 }
  0x46   : > { %5715 = vmatprep.subr.bf16.mxu0 %v5714_v22 }
  0x49   : > { %5717 = vmatpush3.bf16.msra.mxu0 %v5714_v22 }
  0x4a   : > { %5719 = vmatprep.subr.bf16.mxu0 %v5718_v26 }
  0x4d   : > { %5721 = vmatpush3.bf16.msra.mxu0 %v5718_v26  ;;  %v4422_v26 = vld [vmem:[%s7875_s5 + $0x80] sm:$0xff] }
  0x4e   : > { %5723 = vmatprep.subr.bf16.mxu0 %v5722_v30  ;;  %v5782_v29 = vpack.c.bf16 %v4423_v27, %v4422_v26  ;;  %v4416_v26 = vld [vmem:[%s7874_s4 + $0xd0] sm:$0xff]  ;;  %v4417_v27 = vld [vmem:[%s7874_s4 + $0xd8] sm:$0xff] }
  0x51   : > { %5725 = vmatpush3.bf16.msra.mxu0 %v5722_v30  ;;  %v4424_v30 = vld [vmem:[%s7875_s5 + $0x90] sm:$0xff] }
  0x52   : > { %5727 = vmatprep.subr.bf16.mxu0 %v5726_v33  ;;  %v5786_v32 = vpack.c.bf16 %v4425_v31, %v4424_v30  ;;  %v4418_v30 = vld [vmem:[%s7874_s4 + $0xe0] sm:$0xff]  ;;  %v4419_v31 = vld [vmem:[%s7874_s4 + $0xe8] sm:$0xff] }
  0x55   : > { %5729 = vmatpush3.bf16.msra.mxu0 %v5726_v33  ;;  %v4426_v33 = vld [vmem:[%s7875_s5 + $0xa0] sm:$0xff] }
  0x58   : > { %5119 = vmatmul.mubr.f32.vlgmr.msra.gmra.mrb[4].mxu0 %v6709_v56 }
  0x59   : > { %5121 = vmatprep.mubr.f32.mxu0 %v6713_v58 }
  0x5c   : > { %5122 = vmatmul.mubr.f32.gmra.mrb[6].mxu0 %v6733_v5 }
 0x109   : > { %v5082_v34 = vpop.f32.mrb[0].mxu1 }
 0x10a   : > { %v781_v35 = vpop.f32.mrb[1].mxu1 }
 0x10b   : > { %v5044_v38 = vpop.f32.mrb[0].mxu0  ;;  %v5730_v39 = vpack.c.bf16 %v5082_v34, %v781_v35  ;;  %v4427_v34 = vld [vmem:[%s7875_s5 + $0xa8] sm:$0xff] }
 0x10c   : > { %v680_v40 = vpop.f32.mrb[1].mxu0  ;;  %v5790_v35 = vpack.c.bf16 %v4427_v34, %v4426_v33  ;;  %v4420_v33 = vld [vmem:[%s7874_s4 + $0xf0] sm:$0xff]  ;;  %v4421_v34 = vld [vmem:[%s7874_s4 + $0xf8] sm:$0xff] }
 0x10d   : > { %5128 = vmatprep.mubr.msk.f32.mxu0 %vm901_vm0, %v680_v40  ;;  %v5085_v41 = vpop.f32.mrb[2].mxu1  ;;  %5732 = vmatprep.subr.msk.bf16.mxu0 %vm6795_vm1, %v5730_v39 }
 0x10e   : > { %v791_v42 = vpop.f32.mrb[3].mxu1  ;;  %5735 = vmatpush3.bf16.xpose.msk.msra.mxu0 %vm6795_vm1, %v5730_v39  ;;  %v4429_v39 = vld [vmem:[%s7875_s5 + $0xb8] sm:$0xff] }
 0x10f   : > { %v5047_v43 = vpop.f32.mrb[2].mxu0  ;;  %v5736_v44 = vpack.c.bf16 %v5085_v41, %v791_v42  ;;  %5783 = vmatprep.subr.bf16.mxu0 %v5782_v29  ;;  %v4430_v41 = vld [vmem:[%s7875_s5 + $0xc0] sm:$0xff]  ;;  %v4431_v42 = vld [vmem:[%s7875_s5 + $0xc8] sm:$0xff] }
 0x110   : > { %v690_v45 = vpop.f32.mrb[3].mxu0 }
 0x111   : > { %5135 = vmatprep.mubr.msk.f32.mxu1 %vm901_vm0, %v690_v45  ;;  %5738 = vmatprep.subr.msk.bf16.mxu1 %vm6795_vm1, %v5736_v44  ;;  %v4433_v45 = vld [vmem:[%s7875_s5 + $0xd8] sm:$0xff] }
 0x112   : > { %5741 = vmatpush3.bf16.xpose.msk.msra.mxu1 %vm6795_vm1, %v5736_v44  ;;  %v4432_v44 = vld [vmem:[%s7875_s5 + $0xd0] sm:$0xff] }
 0x115   : > { %5129 = vmatmul.mubr.msk.f32.vlgmr.msra.gmra.mrb[8].mxu0 %vm901_vm0, %v5044_v38  ;;  %v4428_v38 = vld [vmem:[%s7875_s5 + $0xb0] sm:$0xff] }
 0x116   : > { %5222 = vmatprep.mubr.f32.mxu0 %v6642_v28  ;;  %5785 = vmatpush3.bf16.msra.mxu0 %v5782_v29  ;;  %v5794_v40 = vpack.c.bf16 %v4429_v39, %v4428_v38  ;;  %v5770_v29 = vpack.c.bf16 %v4417_v27, %v4416_v26 }
 0x117   : > { %5787 = vmatprep.subr.bf16.mxu0 %v5786_v32 }
 0x119   : > { %5136 = vmatmul.mubr.msk.f32.vlgmr.msra.gmra.mrb[4].mxu1 %vm901_vm0, %v5047_v43  ;;  %v5798_v43 = vpack.c.bf16 %v4431_v42, %v4430_v41 }
 0x11a   : > { %5789 = vmatpush3.bf16.msra.mxu0 %v5786_v32  ;;  %v5774_v32 = vpack.c.bf16 %v4419_v31, %v4418_v30 }
 0x11b   : > { %5791 = vmatprep.subr.bf16.mxu0 %v5790_v35 }
 0x11e   : > { %5793 = vmatpush3.bf16.msra.mxu0 %v5790_v35  ;;  %v5778_v35 = vpack.c.bf16 %v4421_v34, %v4420_v33 }
 0x11f   : > { %5795 = vmatprep.subr.bf16.mxu0 %v5794_v40 }
 0x122   : > { %5797 = vmatpush3.bf16.msra.mxu0 %v5794_v40 }
 0x123   : > { %5799 = vmatprep.subr.bf16.mxu0 %v5798_v43 }
 0x126   : > { %5801 = vmatpush3.bf16.msra.mxu0 %v5798_v43 }
 0x12b   : > { %v5120_v46 = vpop.f32.mrb[4].mxu0 }
 0x12c   : > { %v882_v47 = vpop.f32.mrb[5].mxu0 }
 0x12d   : > { %v5742_v48 = vpack.c.bf16 %v5120_v46, %v882_v47  ;;  %v5802_v46 = vpack.c.bf16 %v4433_v45, %v4432_v44  ;;  %v4434_v47 = vld [vmem:[%s7875_s5 + $0xe0] sm:$0xff] }
 0x12f   : > { %5743 = vmatprep.subr.bf16.mxu1 %v5742_v48  ;;  %v5123_v49 = vpop.f32.mrb[6].mxu0  ;;  %5803 = vmatprep.subr.bf16.mxu0 %v5802_v46 }
 0x130   : > { %5745 = vmatpush3.bf16.msra.mxu1 %v5742_v48  ;;  %v892_v50 = vpop.f32.mrb[7].mxu0  ;;  %5805 = vmatpush3.bf16.msra.mxu0 %v5802_v46  ;;  %v4435_v48 = vld [vmem:[%s7875_s5 + $0xe8] sm:$0xff] }
 0x131   : > { %v6812_v51 = vpack.c.bf16 %v5123_v49, %v892_v50  ;;  %v5806_v49 = vpack.c.bf16 %v4435_v48, %v4434_v47  ;;  %v4436_v50 = vld [vmem:[%s7875_s5 + $0xf0] sm:$0xff] }
 0x133   : > { %5747 = vmatprep.subr.bf16.mxu1 %v6812_v51  ;;  %5807 = vmatprep.subr.bf16.mxu0 %v5806_v49 }
 0x134   : > { %5809 = vmatpush3.bf16.msra.mxu0 %v5806_v49 }
 0x1e8   : > { %v5130_v52 = vpop.f32.mrb[8].mxu0 }
 0x1e9   : > { %v980_v53 = vpop.f32.mrb[9].mxu0  ;;  %v1080_v60 = vsel %vm1076_vm2, %v5130_v52, -inf }
 0x1ea   : > { %v1077_v54 = vsel %vm1076_vm2, %v980_v53, -inf }
 0x1eb   : > { %1078 = vmax.xlane.f32.xlu0 %v1077_v54 }
 0x1ec   : > { %v5137_v55 = vpop.f32.mrb[4].mxu1 }
 0x1ed   : > { %v1067_v57 = vpop.f32.mrb[5].mxu1  ;;  %v1086_v61 = vsel %vm1076_vm2, %v5137_v55, -inf }
 0x1ee   : > { %v1083_v59 = vsel %vm1076_vm2, %v1067_v57, -inf }
 0x1ef   : > { %1084 = vmax.xlane.f32.xlu1 %v1083_v59  ;;  %1081 = vmax.xlane.f32.xlu0 %v1080_v60 }
 0x1f3   : > { %1087 = vmax.xlane.f32.xlu1 %v1086_v61 }
 0x278   : > { %v1079_v62 = vpop.xlane.xlu0 %1078 }
 0x279   : > { %v1089_v63 = vsub.f32 %v980_v53, %v1079_v62  ;;  %v4406_v62 = vld [vmem:[%s7874_s4 + $0x80] sm:$0xff] }
 0x27b   : > { %v1093_v0 = vmul.f32 1.442695, %v1089_v63  ;;  %v4407_v63 = vld [vmem:[%s7874_s4 + $0x88] sm:$0xff] }
 0x27c   : > { %v1085_v2 = vpop.xlane.xlu1 %1084  ;;  %v1082_v3 = vpop.xlane.xlu0 %1081 }
 0x27d   : > { %6288 = vpow2.f32 %v1093_v0  ;;  %v1091_v6 = vsub.f32 %v1067_v57, %v1085_v2  ;;  %v1090_v9 = vsub.f32 %v5130_v52, %v1082_v3  ;;  %v4437_v52 = vld [vmem:[%s7875_s5 + $0xf8] sm:$0xff] }
 0x27e   : > { %v5810_v53 = vpack.c.bf16 %v4437_v52, %v4436_v50 }
 0x27f   : > { %v1097_v10 = vmul.f32 1.442695, %v1091_v6  ;;  %v1095_v11 = vmul.f32 1.442695, %v1090_v9  ;;  %v5750_v9 = vpack.c.bf16 %v4407_v63, %v4406_v62  ;;  %v4443_v62 = vld [vmem:[%s7876_s6 + $0xa8] sm:$0xff] }
 0x280   : > { %v1088_v13 = vpop.xlane.xlu1 %1087  ;;  %5811 = vmatprep.subr.bf16.mxu0 %v5810_v53 }
 0x281   : > { %6290 = vpow2.f32 %v1097_v10  ;;  %v1092_v14 = vsub.f32 %v5137_v55, %v1088_v13  ;;  %5813 = vmatpush3.bf16.msra.mxu0 %v5810_v53  ;;  %v4408_v10 = vld [vmem:[%s7874_s4 + $0x90] sm:$0xff]  ;;  %v4438_v53 = vld [vmem:[%s7876_s6 + $0x80] sm:$0xff] }
 0x282   : > { %6292 = vpow2.f32 %v1095_v11  ;;  %v4409_v11 = vld [vmem:[%s7874_s4 + $0x98] sm:$0xff] }
 0x283   : > { %v1099_v16 = vmul.f32 1.442695, %v1092_v14 }
 0x284   : > { %5223 = vmatmul.mubr.f32.vlgmr.msra.gmra.mrb[10].mxu0 %v6721_v1 }
 0x285   : > { %6294 = vpow2.f32 %v1099_v16  ;;  %5225 = vmatprep.mubr.f32.mxu0 %v6730_v4  ;;  %v5754_v16 = vpack.c.bf16 %v4409_v11, %v4408_v10  ;;  %v4448_v11 = vld [vmem:[%s7876_s6 + $0xd0] sm:$0xff] }
 0x287   : > { %v6819_v17 = vpop.eup %6288 }
 0x288   : > { %v1101_v18 = vsel %vm1076_vm2, %v6819_v17, 0.0  ;;  %5226 = vmatmul.mubr.f32.gmra.mrb[12].mxu0 %v6744_v12 }
 0x289   : > { %1102 = vadd.xlane.f32.xlu0 %v1101_v18  ;;  %v4411_v18 = vld [vmem:[%s7874_s4 + $0xa8] sm:$0xff] }
 0x28b   : > { %v6823_v19 = vpop.eup %6290 }
 0x28c   : > { %v6825_v20 = vpop.eup %6292  ;;  %v1107_v21 = vsel %vm1076_vm2, %v6823_v19, 0.0 }
 0x28d   : > { %1108 = vadd.xlane.f32.xlu0 %v1107_v21  ;;  %v1104_v22 = vsel %vm1076_vm2, %v6825_v20, 0.0 }
 0x28e   : > { %1105 = vadd.xlane.f32.xlu1 %v1104_v22  ;;  %v4414_v22 = vld [vmem:[%s7874_s4 + $0xc0] sm:$0xff] }
 0x28f   : > { %v6831_v24 = vpop.eup %6294 }
 0x290   : > { %v1110_v25 = vsel %vm1076_vm2, %v6831_v24, 0.0 }
 0x292   : > { %1111 = vadd.xlane.f32.xlu1 %v1110_v25 }
 0x316   : > { %v1103_v54 = vpop.xlane.xlu0 %1102 }
 0x317   : > { %6296 = vrcp.f32 %v1103_v54  ;;  %v4439_v54 = vld [vmem:[%s7876_s6 + $0x88] sm:$0xff] }
 0x31a   : > { %v1109_v55 = vpop.xlane.xlu0 %1108 }
 0x31b   : > { %v1106_v57 = vpop.xlane.xlu1 %1105  ;;  %6298 = vrcp.f32 %v1109_v55  ;;  %v4440_v55 = vld [vmem:[%s7876_s6 + $0x90] sm:$0xff] }
 0x31c   : > { %6300 = vrcp.f32 %v1106_v57  ;;  %v5814_v57 = vpack.c.bf16 %v4439_v54, %v4438_v53 }
 0x31f   : > { %v1112_v59 = vpop.xlane.xlu1 %1111 }
 0x320   : > { %6302 = vrcp.f32 %v1112_v59  ;;  %v4441_v59 = vld [vmem:[%s7876_s6 + $0x98] sm:$0xff] }
 0x321   : > { %v6297_v60 = vpop.eup %6296 }
 0x322   : > { %v1117_v61 = vmul.f32 %v6297_v60, %v6819_v17  ;;  %v4410_v17 = vld [vmem:[%s7874_s4 + $0xa0] sm:$0xff]  ;;  %v5818_v60 = vpack.c.bf16 %v4441_v59, %v4440_v55 }
 0x324   : > { %5142 = vmatprep.mubr.msk.f32.mxu1 %vm1076_vm2, %v1117_v61  ;;  %v4442_v61 = vld [vmem:[%s7876_s6 + $0xa0] sm:$0xff] }
 0x325   : > { %v6299_v0 = vpop.eup %6298  ;;  %v5822_v63 = vpack.c.bf16 %v4443_v62, %v4442_v61 }
 0x326   : > { %v6301_v2 = vpop.eup %6300  ;;  %v1119_v3 = vmul.f32 %v6299_v0, %v6823_v19  ;;  %v4412_v19 = vld [vmem:[%s7874_s4 + $0xb0] sm:$0xff] }
 0x327   : > { %v1118_v6 = vmul.f32 %v6301_v2, %v6825_v20  ;;  %v4413_v20 = vld [vmem:[%s7874_s4 + $0xb8] sm:$0xff]  ;;  %v4444_v0 = vld [vmem:[%s7876_s6 + $0xb0] sm:$0xff] }
 0x328   : > { %v5762_v21 = vpack.c.bf16 %v4413_v20, %v4412_v19  ;;  %v4445_v2 = vld [vmem:[%s7876_s6 + $0xb8] sm:$0xff] }
 0x329   : > { %5143 = vmatmul.mubr.msk.f32.vlgmr.msra.gmra.mrb[6].mxu1 %vm1076_vm2, %v1118_v6  ;;  %v4446_v6 = vld [vmem:[%s7876_s6 + $0xc0] sm:$0xff]  ;;  %v4453_v19 = vld [vmem:[%s7876_s6 + $0xf8] sm:$0xff] }
 0x32a   : > { %v6303_v13 = vpop.eup %6302  ;;  %5749 = vmatpush3.bf16.msra.mxu1 %v6812_v51  ;;  %5149 = vmatprep.mubr.msk.f32.mxu1 %vm1076_vm2, %v1119_v3  ;;  %v5758_v51 = vpack.c.bf16 %v4411_v18, %v4410_v17  ;;  %v5826_v3 = vpack.c.bf16 %v4445_v2, %v4444_v0  ;;  %v4451_v17 = vld [vmem:[%s7876_s6 + $0xe8] sm:$0xff] }
 0x32b   : > { %v1120_v14 = vmul.f32 %v6303_v13, %v6831_v24  ;;  %5751 = vmatprep.subr.bf16.mxu1 %v5750_v9  ;;  %v4415_v24 = vld [vmem:[%s7874_s4 + $0xc8] sm:$0xff]  ;;  %v4449_v13 = vld [vmem:[%s7876_s6 + $0xd8] sm:$0xff] }
 0x32c   : > { %v5766_v25 = vpack.c.bf16 %v4415_v24, %v4414_v22 }
 0x32d   : > { %5150 = vmatmul.mubr.msk.f32.vlgmr.msra.gmra.mrb[8].mxu1 %vm1076_vm2, %v1120_v14  ;;  %v5834_v14 = vpack.c.bf16 %v4449_v13, %v4448_v11 }
 0x32e   : > { %5753 = vmatpush3.bf16.msra.mxu1 %v5750_v9  ;;  %5184 = vmatprep.mubr.f32.mxu1 %v6669_v37  ;;  %v4447_v9 = vld [vmem:[%s7876_s6 + $0xc8] sm:$0xff] }
 0x32f   : > { %5755 = vmatprep.subr.bf16.mxu1 %v5754_v16  ;;  %v5830_v10 = vpack.c.bf16 %v4447_v9, %v4446_v6  ;;  %v4466_v9 = vld [vmem:[%s7877_s7 + $0x20] sm:$0xff] }
 0x332   : > { %5757 = vmatpush3.bf16.msra.mxu1 %v5754_v16  ;;  %v4450_v16 = vld [vmem:[%s7876_s6 + $0xe0] sm:$0xff] }
 0x333   : > { %5759 = vmatprep.subr.bf16.mxu1 %v5758_v51  ;;  %v5838_v18 = vpack.c.bf16 %v4451_v17, %v4450_v16 }
 0x336   : > { %5761 = vmatpush3.bf16.msra.mxu1 %v5758_v51  ;;  %v4452_v51 = vld [vmem:[%s7876_s6 + $0xf0] sm:$0xff] }
 0x337   : > { %5763 = vmatprep.subr.bf16.mxu1 %v5762_v21  ;;  %v5842_v20 = vpack.c.bf16 %v4453_v19, %v4452_v51  ;;  %v4469_v51 = vld [vmem:[%s7877_s7 + $0x38] sm:$0xff] }
 0x33a   : > { %5765 = vmatpush3.bf16.msra.mxu1 %v5762_v21 }
 0x33b   : > { %5767 = vmatprep.subr.bf16.mxu1 %v5766_v25 }
 0x33e   : > { %5769 = vmatpush3.bf16.msra.mxu1 %v5766_v25 }
 0x33f   : > { %5771 = vmatprep.subr.bf16.mxu1 %v5770_v29 }
 0x342   : > { %5773 = vmatpush3.bf16.msra.mxu1 %v5770_v29 }
 0x343   : > { %5775 = vmatprep.subr.bf16.mxu1 %v5774_v32 }
 0x346   : > { %5777 = vmatpush3.bf16.msra.mxu1 %v5774_v32 }
 0x347   : > { %5779 = vmatprep.subr.bf16.mxu1 %v5778_v35 }
 0x34a   : > { %5781 = vmatpush3.bf16.msra.mxu1 %v5778_v35 }
 0x34b   : > { %5815 = vmatprep.subr.bf16.mxu1 %v5814_v57 }
 0x34d   : > { %5185 = vmatmul.mubr.f32.vlgmr.msra.gmra.mrb[10].mxu1 %v6736_v7 }
 0x34e   : > { %5187 = vmatprep.mubr.f32.mxu1 %v6738_v8  ;;  %5817 = vmatpush3.bf16.msra.mxu1 %v5814_v57 }
 0x34f   : > { %5819 = vmatprep.subr.bf16.mxu1 %v5818_v60 }
 0x351   : > { %5188 = vmatmul.mubr.f32.gmra.mrb[12].mxu1 %v6754_v15 }
 0x352   : > { %5260 = vmatprep.mubr.f32.mxu1 %v6632_v23  ;;  %5821 = vmatpush3.bf16.msra.mxu1 %v5818_v60 }
 0x353   : > { %5823 = vmatprep.subr.bf16.mxu1 %v5822_v63 }
 0x356   : > { %5825 = vmatpush3.bf16.msra.mxu1 %v5822_v63 }
 0x357   : > { %v5224_v38 = vpop.f32.mrb[10].mxu0  ;;  %5827 = vmatprep.subr.bf16.mxu1 %v5826_v3 }
 0x358   : > { %v1472_v39 = vpop.f32.mrb[11].mxu0 }
 0x359   : > { %v5846_v40 = vpack.c.bf16 %v5224_v38, %v1472_v39 }
 0x35a   : > { %5829 = vmatpush3.bf16.msra.mxu1 %v5826_v3 }
 0x35b   : > { %5848 = vmatprep.subr.msk.bf16.mxu0 %vm6795_vm1, %v5846_v40  ;;  %v5227_v41 = vpop.f32.mrb[12].mxu0  ;;  %5831 = vmatprep.subr.bf16.mxu1 %v5830_v10 }
 0x35c   : > { %5851 = vmatpush3.bf16.xpose.msk.msra.mxu0 %vm6795_vm1, %v5846_v40  ;;  %v1482_v42 = vpop.f32.mrb[13].mxu0 }
 0x35d   : > { %v5852_v43 = vpack.c.bf16 %v5227_v41, %v1482_v42 }
 0x35e   : > { %5833 = vmatpush3.bf16.msra.mxu1 %v5830_v10  ;;  %v4467_v10 = vld [vmem:[%s7877_s7 + $0x28] sm:$0xff] }
 0x35f   : > { %5854 = vmatprep.subr.msk.bf16.mxu0 %vm6795_vm1, %v5852_v43  ;;  %5835 = vmatprep.subr.bf16.mxu1 %v5834_v14  ;;  %v5866_v16 = vpack.c.bf16 %v4467_v10, %v4466_v9  ;;  %v4497_v9 = vld [vmem:[%s7875_s5 + $0x118] sm:$0xff] }
 0x362   : > { %5837 = vmatpush3.bf16.msra.mxu1 %v5834_v14 }
 0x363   : > { %5839 = vmatprep.subr.bf16.mxu1 %v5838_v18 }
 0x366   : > { %5841 = vmatpush3.bf16.msra.mxu1 %v5838_v18  ;;  %v4468_v18 = vld [vmem:[%s7877_s7 + $0x30] sm:$0xff] }
 0x367   : > { %5843 = vmatprep.subr.bf16.mxu1 %v5842_v20 }
 0x36a   : > { %5845 = vmatpush3.bf16.msra.mxu1 %v5842_v20 }
 0x36d   : > { %5261 = vmatmul.mubr.f32.vlgmr.msra.gmra.mrb[14].mxu1 %v6709_v56 }
 0x36e   : > { %5263 = vmatprep.mubr.f32.mxu1 %v6713_v58 }
 0x371   : > { %5264 = vmatmul.mubr.f32.gmra.mrb[16].mxu1 %v6733_v5 }
 0x372   : > { %5354 = vmatprep.mubr.f32.mxu1 %v6669_v37 }
 0x3fc   : > { %v6954_v44 = vpop.f32.mrb[6].mxu1 }
 0x3fd   : > { %v6956_v45 = vpop.f32.mrb[7].mxu1 }
 0x400   : > { %v6958_v46 = vpop.f32.mrb[8].mxu1 }
 0x401   : > { %v6960_v47 = vpop.f32.mrb[9].mxu1 }
 0x420   : > { %v5186_v48 = vpop.f32.mrb[10].mxu1 }
 0x421   : > { %v1370_v49 = vpop.f32.mrb[11].mxu1 }
 0x422   : > { %5270 = vmatprep.mubr.msk.f32.mxu0 %vm901_vm0, %v1370_v49 }
 0x423   : > { %5271 = vmatmul.mubr.msk.f32.vlgmr.msra.gmra.mrb[14].mxu0 %vm901_vm0, %v5186_v48 }
 0x424   : > { %5857 = vmatpush3.bf16.xpose.msk.msra.mxu0 %vm6795_vm1, %v5852_v43  ;;  %v5189_v50 = vpop.f32.mrb[12].mxu1 }
 0x425   : > { %v1380_v52 = vpop.f32.mrb[13].mxu1 }
 0x426   : > { %5277 = vmatprep.mubr.msk.f32.mxu0 %vm901_vm0, %v1380_v52 }
 0x42b   : > { %5278 = vmatmul.mubr.msk.f32.vlgmr.msra.gmra.mrb[16].mxu0 %vm901_vm0, %v5189_v50 }
 0x440   : > { %v5262_v55 = vpop.f32.mrb[14].mxu1 }
 0x441   : > { %v1574_v57 = vpop.f32.mrb[15].mxu1 }
 0x442   : > { %v5858_v59 = vpack.c.bf16 %v5262_v55, %v1574_v57  ;;  %v1285_v57 = vld [vmem:[%s7877_s7 + $0x10] sm:$0xff] }
 0x444   : > { %5859 = vmatprep.subr.bf16.mxu0 %v5858_v59  ;;  %v5265_v60 = vpop.f32.mrb[16].mxu1 }
 0x445   : > { %5861 = vmatpush3.bf16.msra.mxu0 %v5858_v59  ;;  %v1584_v61 = vpop.f32.mrb[17].mxu1  ;;  %v1286_v59 = vld [vmem:[%s7877_s7 + $0x18] sm:$0xff] }
 0x446   : > { %v5862_v62 = vpack.c.bf16 %v5265_v60, %v1584_v61 }
 0x448   : > { %5863 = vmatprep.subr.bf16.mxu0 %v5862_v62 }
 0x4f6   : > { %v5272_v21 = vpop.f32.mrb[14].mxu0 }
 0x4f7   : > { %v1671_v22 = vpop.f32.mrb[15].mxu0  ;;  %v1770_v24 = vsel %vm1076_vm2, %v5272_v21, -inf }
 0x4f8   : > { %1771 = vmax.xlane.f32.xlu1 %v1770_v24  ;;  %v1767_v25 = vsel %vm1076_vm2, %v1671_v22, -inf  ;;  %v1283_v24 = vld [vmem:[%s7877_s7] sm:$0xff] }
 0x4f9   : > { %1768 = vmax.xlane.f32.xlu0 %v1767_v25  ;;  %v1284_v25 = vld [vmem:[%s7877_s7 + $0x8] sm:$0xff] }
 0x4fe   : > { %v5279_v26 = vpop.f32.mrb[16].mxu0 }
 0x4ff   : > { %v1758_v27 = vpop.f32.mrb[17].mxu0  ;;  %v1776_v29 = vsel %vm1076_vm2, %v5279_v26, -inf }
 0x500   : > { %1777 = vmax.xlane.f32.xlu1 %v1776_v29  ;;  %v1773_v56 = vsel %vm1076_vm2, %v1758_v27, -inf  ;;  %v4479_v29 = vld [vmem:[%s7874_s4 + $0x108] sm:$0xff] }
 0x501   : > { %1774 = vmax.xlane.f32.xlu0 %v1773_v56 }
 0x585   : > { %v1772_v58 = vpop.xlane.xlu1 %1771 }
 0x586   : > { %v1780_v5 = vsub.f32 %v5272_v21, %v1772_v58  ;;  %v1769_v30 = vpop.xlane.xlu0 %1768  ;;  %v4480_v58 = vld [vmem:[%s7874_s4 + $0x110] sm:$0xff] }
 0x587   : > { %v1779_v31 = vsub.f32 %v1671_v22, %v1769_v30  ;;  %v5870_v22 = vpack.c.bf16 %v4469_v51, %v4468_v18  ;;  %v4505_v51 = vld [vmem:[%s7875_s5 + $0x158] sm:$0xff] }
 0x588   : > { %v1785_v32 = vmul.f32 1.442695, %v1780_v5  ;;  %v4481_v5 = vld [vmem:[%s7874_s4 + $0x118] sm:$0xff] }
 0x589   : > { %v1783_v33 = vmul.f32 1.442695, %v1779_v31  ;;  %v5886_v30 = vpack.c.bf16 %v4481_v5, %v4480_v58  ;;  %v4482_v31 = vld [vmem:[%s7874_s4 + $0x120] sm:$0xff] }
 0x58a   : > { %6304 = vpow2.f32 %v1785_v32  ;;  %v4483_v32 = vld [vmem:[%s7874_s4 + $0x128] sm:$0xff] }
 0x58b   : > { %6306 = vpow2.f32 %v1783_v33  ;;  %v5890_v33 = vpack.c.bf16 %v4483_v32, %v4482_v31 }
 0x58d   : > { %v1778_v34 = vpop.xlane.xlu1 %1777 }
 0x58e   : > { %v1782_v35 = vsub.f32 %v5279_v26, %v1778_v34  ;;  %v1775_v38 = vpop.xlane.xlu0 %1774  ;;  %v5874_v26 = vpack.c.bf16 %v1284_v25, %v1283_v24  ;;  %v4484_v34 = vld [vmem:[%s7874_s4 + $0x130] sm:$0xff]  ;;  %v4509_v25 = vld [vmem:[%s7875_s5 + $0x178] sm:$0xff] }
 0x58f   : > { %v1781_v39 = vsub.f32 %v1758_v27, %v1775_v38  ;;  %v4478_v27 = vld [vmem:[%s7874_s4 + $0x100] sm:$0xff]  ;;  %v4508_v24 = vld [vmem:[%s7875_s5 + $0x170] sm:$0xff] }
 0x590   : > { %v1789_v40 = vmul.f32 1.442695, %v1782_v35  ;;  %v5882_v56 = vpack.c.bf16 %v4479_v29, %v4478_v27  ;;  %v4485_v35 = vld [vmem:[%s7874_s4 + $0x138] sm:$0xff] }
 0x591   : > { %v1787_v41 = vmul.f32 1.442695, %v1781_v39  ;;  %v5894_v38 = vpack.c.bf16 %v4485_v35, %v4484_v34  ;;  %v4486_v39 = vld [vmem:[%s7874_s4 + $0x140] sm:$0xff] }
 0x592   : > { %6308 = vpow2.f32 %v1789_v40  ;;  %5883 = vmatprep.subr.bf16.mxu1 %v5882_v56  ;;  %v4487_v40 = vld [vmem:[%s7874_s4 + $0x148] sm:$0xff]  ;;  %v4510_v35 = vld [vmem:[%s7876_s6 + $0x100] sm:$0xff] }
 0x593   : > { %6310 = vpow2.f32 %v1787_v41  ;;  %5885 = vmatpush3.bf16.msra.mxu1 %v5882_v56  ;;  %v5898_v41 = vpack.c.bf16 %v4487_v40, %v4486_v39  ;;  %v4512_v39 = vld [vmem:[%s7876_s6 + $0x110] sm:$0xff] }
 0x594   : > { %v6305_v42 = vpop.eup %6304  ;;  %5887 = vmatprep.subr.bf16.mxu1 %v5886_v30 }
 0x595   : > { %v6307_v43 = vpop.eup %6306  ;;  %v1794_v48 = vsel %vm1076_vm2, %v6305_v42, 0.0 }
 0x596   : > { %1795 = vadd.xlane.f32.xlu1 %v1794_v48  ;;  %v1791_v49 = vsel %vm1076_vm2, %v6307_v43, 0.0 }
 0x597   : > { %1792 = vadd.xlane.f32.xlu0 %v1791_v49  ;;  %5889 = vmatpush3.bf16.msra.mxu1 %v5886_v30  ;;  %v4490_v49 = vld [vmem:[%s7874_s4 + $0x160] sm:$0xff] }
 0x598   : > { %5891 = vmatprep.subr.bf16.mxu1 %v5890_v33 }
 0x59b   : > { %5893 = vmatpush3.bf16.msra.mxu1 %v5890_v33 }
 0x59c   : > { %v6309_v50 = vpop.eup %6308  ;;  %5895 = vmatprep.subr.bf16.mxu1 %v5894_v38 }
 0x59d   : > { %v6311_v52 = vpop.eup %6310  ;;  %v1800_v53 = vsel %vm1076_vm2, %v6309_v50, 0.0 }
 0x59e   : > { %1801 = vadd.xlane.f32.xlu1 %v1800_v53  ;;  %v1797_v54 = vsel %vm1076_vm2, %v6311_v52, 0.0  ;;  %v4492_v53 = vld [vmem:[%s7874_s4 + $0x170] sm:$0xff] }
 0x59f   : > { %1798 = vadd.xlane.f32.xlu0 %v1797_v54  ;;  %5897 = vmatpush3.bf16.msra.mxu1 %v5894_v38  ;;  %v4493_v54 = vld [vmem:[%s7874_s4 + $0x178] sm:$0xff]  ;;  %v4511_v38 = vld [vmem:[%s7876_s6 + $0x108] sm:$0xff] }
 0x5a0   : > { %5899 = vmatprep.subr.bf16.mxu1 %v5898_v41  ;;  %v5910_v55 = vpack.c.bf16 %v4493_v54, %v4492_v53  ;;  %v5946_v40 = vpack.c.bf16 %v4511_v38, %v4510_v35  ;;  %v4518_v54 = vld [vmem:[%s7876_s6 + $0x140] sm:$0xff] }
 0x5a3   : > { %5901 = vmatpush3.bf16.msra.mxu1 %v5898_v41  ;;  %v4513_v41 = vld [vmem:[%s7876_s6 + $0x118] sm:$0xff] }
 0x623   : > { %v1796_v63 = vpop.xlane.xlu1 %1795 }
 0x624   : > { %6312 = vrcp.f32 %v1796_v63  ;;  %v1793_v0 = vpop.xlane.xlu0 %1792  ;;  %v4494_v63 = vld [vmem:[%s7875_s5 + $0x100] sm:$0xff] }
 0x625   : > { %6314 = vrcp.f32 %v1793_v0 }
 0x62b   : > { %v1802_v2 = vpop.xlane.xlu1 %1801 }
 0x62c   : > { %6316 = vrcp.f32 %v1802_v2  ;;  %v1799_v3 = vpop.xlane.xlu0 %1798 }
 0x62d   : > { %6318 = vrcp.f32 %v1799_v3 }
 0x62e   : > { %v6313_v6 = vpop.eup %6312 }
 0x62f   : > { %v6315_v11 = vpop.eup %6314  ;;  %v1808_v14 = vmul.f32 %v6313_v6, %v6305_v42  ;;  %v4488_v42 = vld [vmem:[%s7874_s4 + $0x150] sm:$0xff] }
 0x630   : > { %v1807_v13 = vmul.f32 %v6315_v11, %v6307_v43  ;;  %v4489_v43 = vld [vmem:[%s7874_s4 + $0x158] sm:$0xff]  ;;  %v4496_v6 = vld [vmem:[%s7875_s5 + $0x110] sm:$0xff]  ;;  %v4498_v11 = vld [vmem:[%s7875_s5 + $0x120] sm:$0xff] }
 0x631   : > { %v5902_v48 = vpack.c.bf16 %v4489_v43, %v4488_v42  ;;  %v5918_v10 = vpack.c.bf16 %v4497_v9, %v4496_v6  ;;  %v5950_v42 = vpack.c.bf16 %v4513_v41, %v4512_v39  ;;  %v4514_v43 = vld [vmem:[%s7876_s6 + $0x120] sm:$0xff]  ;;  %v7233_v6 = vld [vmem:[%s6618_s16 + $0x8] sm:$0xff]  ;;  %v7237_v9 = vld [vmem:[%s6618_s16 + $0x10] sm:$0xff] }
 0x632   : > { %5284 = vmatprep.mubr.msk.f32.mxu0 %vm1076_vm2, %v1807_v13  ;;  %v4499_v13 = vld [vmem:[%s7875_s5 + $0x128] sm:$0xff] }
 0x633   : > { %5285 = vmatmul.mubr.msk.f32.vlgmr.msra.gmra.mrb[18].mxu0 %vm1076_vm2, %v1808_v14  ;;  %5903 = vmatprep.subr.bf16.mxu1 %v5902_v48  ;;  %v5922_v14 = vpack.c.bf16 %v4499_v13, %v4498_v11 }
 0x634   : > { %5865 = vmatpush3.bf16.msra.mxu0 %v5862_v62  ;;  %5905 = vmatpush3.bf16.msra.mxu1 %v5902_v48  ;;  %v5878_v62 = vpack.c.bf16 %v1286_v59, %v1285_v57  ;;  %v4515_v48 = vld [vmem:[%s7876_s6 + $0x128] sm:$0xff]  ;;  %v4520_v59 = vld [vmem:[%s7876_s6 + $0x150] sm:$0xff] }
 0x635   : > { %5867 = vmatprep.subr.bf16.mxu0 %v5866_v16 }
 0x636   : > { %v6317_v17 = vpop.eup %6316 }
 0x637   : > { %v6319_v19 = vpop.eup %6318  ;;  %v1810_v21 = vmul.f32 %v6317_v17, %v6309_v50  ;;  %v4491_v50 = vld [vmem:[%s7874_s4 + $0x168] sm:$0xff] }
 0x638   : > { %v1809_v20 = vmul.f32 %v6319_v19, %v6311_v52  ;;  %v5906_v52 = vpack.c.bf16 %v4491_v50, %v4490_v49  ;;  %v4503_v17 = vld [vmem:[%s7875_s5 + $0x148] sm:$0xff]  ;;  %v5954_v49 = vpack.c.bf16 %v4515_v48, %v4514_v43  ;;  %v4516_v50 = vld [vmem:[%s7876_s6 + $0x130] sm:$0xff] }
 0x63a   : > { %5291 = vmatprep.mubr.msk.f32.mxu0 %vm1076_vm2, %v1809_v20  ;;  %5907 = vmatprep.subr.bf16.mxu1 %v5906_v52  ;;  %v4506_v20 = vld [vmem:[%s7875_s5 + $0x160] sm:$0xff] }
 0x63b   : > { %5292 = vmatmul.mubr.msk.f32.vlgmr.msra.gmra.mrb[20].mxu0 %vm1076_vm2, %v1810_v21  ;;  %5909 = vmatpush3.bf16.msra.mxu1 %v5906_v52  ;;  %v4507_v21 = vld [vmem:[%s7875_s5 + $0x168] sm:$0xff]  ;;  %v4517_v52 = vld [vmem:[%s7876_s6 + $0x138] sm:$0xff] }
 0x63c   : > { %5869 = vmatpush3.bf16.msra.mxu0 %v5866_v16  ;;  %5911 = vmatprep.subr.bf16.mxu1 %v5910_v55  ;;  %v4501_v16 = vld [vmem:[%s7875_s5 + $0x138] sm:$0xff]  ;;  %v5958_v53 = vpack.c.bf16 %v4517_v52, %v4516_v50  ;;  %v4538_v52 = vld [vmem:[%s7877_s7 + $0x40] sm:$0xff] }
 0x63d   : > { %5871 = vmatprep.subr.bf16.mxu0 %v5870_v22 }
 0x63f   : > { %5913 = vmatpush3.bf16.msra.mxu1 %v5910_v55  ;;  %v4519_v55 = vld [vmem:[%s7876_s6 + $0x148] sm:$0xff] }
 0x640   : > { %5873 = vmatpush3.bf16.msra.mxu0 %v5870_v22  ;;  %v5938_v22 = vpack.c.bf16 %v4507_v21, %v4506_v20  ;;  %5947 = vmatprep.subr.bf16.mxu1 %v5946_v40  ;;  %v5962_v57 = vpack.c.bf16 %v4519_v55, %v4518_v54 }
 0x641   : > { %5875 = vmatprep.subr.bf16.mxu0 %v5874_v26 }
 0x642   : > { %5355 = vmatmul.mubr.f32.vlgmr.msra.gmra.mrb[18].mxu1 %v6736_v7 }
 0x643   : > { %5357 = vmatprep.mubr.f32.mxu1 %v6738_v8  ;;  %5949 = vmatpush3.bf16.msra.mxu1 %v5946_v40 }
 0x644   : > { %5951 = vmatprep.subr.bf16.mxu1 %v5950_v42 }
 0x646   : > { %5358 = vmatmul.mubr.f32.gmra.mrb[20].mxu1 %v6754_v15 }
 0x647   : > { %5430 = vmatprep.mubr.f32.mxu1 %v6632_v23  ;;  %v4495_v23 = vld [vmem:[%s7875_s5 + $0x108] sm:$0xff]  ;;  %5953 = vmatpush3.bf16.msra.mxu1 %v5950_v42 }
 0x648   : > { %v5914_v0 = vpack.c.bf16 %v4495_v23, %v4494_v63  ;;  %5955 = vmatprep.subr.bf16.mxu1 %v5954_v49  ;;  %v4523_v63 = vld [vmem:[%s7876_s6 + $0x168] sm:$0xff] }
 0x64b   : > { %5957 = vmatpush3.bf16.msra.mxu1 %v5954_v49 }
 0x64c   : > { %5959 = vmatprep.subr.bf16.mxu1 %v5958_v53 }
 0x64f   : > { %5961 = vmatpush3.bf16.msra.mxu1 %v5958_v53  ;;  %v4539_v53 = vld [vmem:[%s7877_s7 + $0x48] sm:$0xff] }
 0x650   : > { %5963 = vmatprep.subr.bf16.mxu1 %v5962_v57 }
 0x653   : > { %5965 = vmatpush3.bf16.msra.mxu1 %v5962_v57 }
 0x706   : > { %v5286_v60 = vpop.f32.mrb[18].mxu0 }
 0x707   : > { %v1883_v61 = vpop.f32.mrb[19].mxu0 }
 0x708   : > { %5302 = vmatprep.mubr.msk.f32.mxu0 %vm901_vm0, %v1883_v61 }
 0x709   : > { %5303 = vmatmul.mubr.msk.f32.vlgmr.msra.gmra.mrb[22].mxu0 %vm901_vm0, %v5286_v60  ;;  %v4521_v60 = vld [vmem:[%s7876_s6 + $0x158] sm:$0xff] }
 0x70a   : > { %5877 = vmatpush3.bf16.msra.mxu0 %v5874_v26  ;;  %v5942_v26 = vpack.c.bf16 %v4509_v25, %v4508_v24  ;;  %v5966_v61 = vpack.c.bf16 %v4521_v60, %v4520_v59  ;;  %v5998_v59 = vpack.c.bf16 %v4539_v53, %v4538_v52  ;;  %v4572_v53 = vld [vmem:[%s7875_s5 + $0x1d0] sm:$0xff] }
 0x70b   : > { %5879 = vmatprep.subr.bf16.mxu0 %v5878_v62 }
 0x70c   : > { %5967 = vmatprep.subr.bf16.mxu1 %v5966_v61 }
 0x70d   : > { %5969 = vmatpush3.bf16.msra.mxu1 %v5966_v61  ;;  %v4540_v61 = vld [vmem:[%s7877_s7 + $0x50] sm:$0xff] }
 0x70e   : > { %v5293_v2 = vpop.f32.mrb[20].mxu0  ;;  %5881 = vmatpush3.bf16.msra.mxu0 %v5878_v62  ;;  %v4522_v62 = vld [vmem:[%s7876_s6 + $0x160] sm:$0xff] }
 0x70f   : > { %v1964_v3 = vpop.f32.mrb[21].mxu0  ;;  %5915 = vmatprep.subr.bf16.mxu0 %v5914_v0  ;;  %v5970_v23 = vpack.c.bf16 %v4523_v63, %v4522_v62  ;;  %v4541_v62 = vld [vmem:[%s7877_s7 + $0x58] sm:$0xff] }
 0x710   : > { %5305 = vmatprep.mubr.msk.f32.mxu0 %vm901_vm0, %v1964_v3 }
 0x711   : > { %5306 = vmatmul.mubr.msk.f32.gmra.mrb[24].mxu0 %vm901_vm0, %v5293_v2  ;;  %v4525_v2 = vld [vmem:[%s7876_s6 + $0x178] sm:$0xff]  ;;  %5971 = vmatprep.subr.bf16.mxu1 %v5970_v23 }
 0x712   : > { %5316 = vmatprep.mubr.msk.f32.mxu0 %vm901_vm0, %v6956_v45  ;;  %v4500_v45 = vld [vmem:[%s7875_s5 + $0x130] sm:$0xff]  ;;  %5973 = vmatpush3.bf16.msra.mxu1 %v5970_v23 }
 0x715   : > { %5317 = vmatmul.mubr.msk.f32.vlgmr.msra.gmra.mrb[22].mxu0 %vm901_vm0, %v6954_v44  ;;  %v5926_v44 = vpack.c.bf16 %v4501_v16, %v4500_v45  ;;  %v5356_v27 = vpop.f32.mrb[18].mxu1 }
 0x716   : > { %5917 = vmatpush3.bf16.msra.mxu0 %v5914_v0  ;;  %5319 = vmatprep.mubr.msk.f32.mxu0 %vm901_vm0, %v6960_v47  ;;  %v4502_v47 = vld [vmem:[%s7875_s5 + $0x140] sm:$0xff]  ;;  %v2255_v29 = vpop.f32.mrb[19].mxu1  ;;  %v4524_v0 = vld [vmem:[%s7876_s6 + $0x170] sm:$0xff] }
 0x717   : > { %5919 = vmatprep.subr.bf16.mxu0 %v5918_v10  ;;  %v5930_v18 = vpack.c.bf16 %v4503_v17, %v4502_v47  ;;  %v5974_v3 = vpack.c.bf16 %v4525_v2, %v4524_v0  ;;  %v6002_v2 = vpack.c.bf16 %v4541_v62, %v4540_v61  ;;  %v4577_v61 = vld [vmem:[%s7875_s5 + $0x1f8] sm:$0xff] }
 0x719   : > { %5320 = vmatmul.mubr.msk.f32.gmra.mrb[24].mxu0 %vm901_vm0, %v6958_v46  ;;  %v4504_v46 = vld [vmem:[%s7875_s5 + $0x150] sm:$0xff]  ;;  %v5359_v56 = vpop.f32.mrb[20].mxu1  ;;  %5975 = vmatprep.subr.bf16.mxu1 %v5974_v3 }
 0x71a   : > { %5921 = vmatpush3.bf16.msra.mxu0 %v5918_v10  ;;  %5392 = vmatprep.mubr.f32.mxu0 %v6642_v28  ;;  %v5934_v19 = vpack.c.bf16 %v4505_v51, %v4504_v46  ;;  %v2265_v58 = vpop.f32.mrb[21].mxu1  ;;  %v7241_v10 = vld [vmem:[%s6618_s16 + $0x18] sm:$0xff] }
 0x71b   : > { %5923 = vmatprep.subr.bf16.mxu0 %v5922_v14  ;;  %5977 = vmatpush3.bf16.msra.mxu1 %v5974_v3  ;;  %v4562_v3 = vld [vmem:[%s7875_s5 + $0x180] sm:$0xff] }
 0x71e   : > { %5925 = vmatpush3.bf16.msra.mxu0 %v5922_v14  ;;  %5431 = vmatmul.mubr.f32.vlgmr.msra.gmra.mrb[22].mxu1 %v7233_v6 }
 0x71f   : > { %5927 = vmatprep.subr.bf16.mxu0 %v5926_v44  ;;  %5433 = vmatprep.mubr.f32.mxu1 %v7237_v9 }
 0x722   : > { %5929 = vmatpush3.bf16.msra.mxu0 %v5926_v44  ;;  %5434 = vmatmul.mubr.f32.gmra.mrb[24].mxu1 %v7241_v10 }
 0x723   : > { %5931 = vmatprep.subr.bf16.mxu0 %v5930_v18  ;;  %5510 = vmatprep.mubr.f32.mxu1 %v6669_v37 }
 0x726   : > { %5933 = vmatpush3.bf16.msra.mxu0 %v5930_v18 }
 0x727   : > { %5935 = vmatprep.subr.bf16.mxu0 %v5934_v19 }
 0x72a   : > { %5937 = vmatpush3.bf16.msra.mxu0 %v5934_v19 }
 0x72b   : > { %5939 = vmatprep.subr.bf16.mxu0 %v5938_v22 }
 0x72e   : > { %5941 = vmatpush3.bf16.msra.mxu0 %v5938_v22 }
 0x72f   : > { %5943 = vmatprep.subr.bf16.mxu0 %v5942_v26 }
 0x732   : > { %5945 = vmatpush3.bf16.msra.mxu0 %v5942_v26 }
 0x735   : > { %5393 = vmatmul.mubr.f32.vlgmr.msra.gmra.mrb[26].mxu0 %v6721_v1 }
 0x736   : > { %5395 = vmatprep.mubr.f32.mxu0 %v6730_v4 }
 0x739   : > { %5396 = vmatmul.mubr.f32.gmra.mrb[28].mxu0 %v6744_v12 }
 0x73a   : > { %5440 = vmatprep.mubr.msk.f32.mxu0 %vm901_vm0, %v2255_v29 }
 0x808   : > { %v5394_v5 = vpop.f32.mrb[26].mxu0 }
 0x809   : > { %v2357_v30 = vpop.f32.mrb[27].mxu0 }
 0x80a   : > { %v5978_v31 = vpack.c.bf16 %v5394_v5, %v2357_v30 }
 0x80c   : > { %5980 = vmatprep.subr.msk.bf16.mxu0 %vm6795_vm1, %v5978_v31  ;;  %v5397_v32 = vpop.f32.mrb[28].mxu0 }
 0x80d   : > { %5983 = vmatpush3.bf16.xpose.msk.msra.mxu0 %vm6795_vm1, %v5978_v31  ;;  %v2367_v33 = vpop.f32.mrb[29].mxu0 }
 0x80e   : > { %v5984_v34 = vpack.c.bf16 %v5397_v32, %v2367_v33 }
 0x810   : > { %5986 = vmatprep.subr.msk.bf16.mxu0 %vm6795_vm1, %v5984_v34 }
 0x814   : > { %5441 = vmatmul.mubr.msk.f32.vlgmr.msra.gmra.mrb[30].mxu0 %vm901_vm0, %v5356_v27 }
 0x815   : > { %5989 = vmatpush3.bf16.xpose.msk.msra.mxu0 %vm6795_vm1, %v5984_v34  ;;  %5447 = vmatprep.mubr.msk.f32.mxu0 %vm901_vm0, %v2265_v58  ;;  %v5432_v34 = vpop.f32.mrb[22].mxu1 }
 0x816   : > { %v2459_v35 = vpop.f32.mrb[23].mxu1 }
 0x817   : > { %v5990_v38 = vpack.c.bf16 %v5432_v34, %v2459_v35  ;;  %v5435_v39 = vpop.f32.mrb[24].mxu1  ;;  %v4565_v34 = vld [vmem:[%s7875_s5 + $0x198] sm:$0xff] }
 0x818   : > { %v2469_v40 = vpop.f32.mrb[25].mxu1 }
 0x819   : > { %5991 = vmatprep.subr.bf16.mxu0 %v5990_v38  ;;  %v5994_v41 = vpack.c.bf16 %v5435_v39, %v2469_v40  ;;  %v4568_v40 = vld [vmem:[%s7875_s5 + $0x1b0] sm:$0xff] }
 0x81c   : > { %5448 = vmatmul.mubr.msk.f32.vlgmr.msra.gmra.mrb[32].mxu0 %vm901_vm0, %v5359_v56 }
 0x81d   : > { %5993 = vmatpush3.bf16.msra.mxu0 %v5990_v38 }
 0x81e   : > { %5995 = vmatprep.subr.bf16.mxu0 %v5994_v41 }
 0x8e7   : > { %v5442_v11 = vpop.f32.mrb[30].mxu0 }
 0x8e8   : > { %v2556_v13 = vpop.f32.mrb[31].mxu0  ;;  %v2655_v14 = vsel %vm1076_vm2, %v5442_v11, -inf }
 0x8e9   : > { %2656 = vmax.xlane.f32.xlu1 %v2655_v14  ;;  %v2652_v45 = vsel %vm1076_vm2, %v2556_v13, -inf  ;;  %v4546_v14 = vld [vmem:[%s7874_s4 + $0x180] sm:$0xff] }
 0x8ea   : > { %2653 = vmax.xlane.f32.xlu0 %v2652_v45  ;;  %v4547_v45 = vld [vmem:[%s7874_s4 + $0x188] sm:$0xff] }
 0x8ef   : > { %v5449_v16 = vpop.f32.mrb[32].mxu0 }
 0x8f0   : > { %v2643_v44 = vpop.f32.mrb[33].mxu0  ;;  %v2661_v47 = vsel %vm1076_vm2, %v5449_v16, -inf }
 0x8f1   : > { %2662 = vmax.xlane.f32.xlu1 %v2661_v47  ;;  %v2658_v17 = vsel %vm1076_vm2, %v2643_v44, -inf  ;;  %v4549_v47 = vld [vmem:[%s7874_s4 + $0x198] sm:$0xff] }
 0x8f2   : > { %2659 = vmax.xlane.f32.xlu0 %v2658_v17 }
 0x976   : > { %v2657_v18 = vpop.xlane.xlu1 %2656 }
 0x977   : > { %v2665_v46 = vsub.f32 %v5442_v11, %v2657_v18  ;;  %v2654_v51 = vpop.xlane.xlu0 %2653  ;;  %v4563_v11 = vld [vmem:[%s7875_s5 + $0x188] sm:$0xff]  ;;  %v4550_v18 = vld [vmem:[%s7874_s4 + $0x1a0] sm:$0xff] }
 0x978   : > { %v2664_v37 = vsub.f32 %v2556_v13, %v2654_v51  ;;  %v6038_v13 = vpack.c.bf16 %v4563_v11, %v4562_v3 }
 0x979   : > { %v2670_v19 = vmul.f32 1.442695, %v2665_v46  ;;  %v4551_v46 = vld [vmem:[%s7874_s4 + $0x1a8] sm:$0xff] }
 0x97a   : > { %v2668_v20 = vmul.f32 1.442695, %v2664_v37  ;;  %v6014_v51 = vpack.c.bf16 %v4551_v46, %v4550_v18  ;;  %v4552_v37 = vld [vmem:[%s7874_s4 + $0x1b0] sm:$0xff]  ;;  %v4583_v18 = vld [vmem:[%s7876_s6 + $0x1a8] sm:$0xff] }
 0x97b   : > { %6320 = vpow2.f32 %v2670_v19  ;;  %v4553_v19 = vld [vmem:[%s7874_s4 + $0x1b8] sm:$0xff] }
 0x97c   : > { %6322 = vpow2.f32 %v2668_v20  ;;  %v6018_v20 = vpack.c.bf16 %v4553_v19, %v4552_v37  ;;  %v4585_v37 = vld [vmem:[%s7876_s6 + $0x1b8] sm:$0xff] }
 0x97e   : > { %v2663_v21 = vpop.xlane.xlu1 %2662 }
 0x97f   : > { %v2667_v22 = vsub.f32 %v5449_v16, %v2663_v21  ;;  %v2660_v24 = vpop.xlane.xlu0 %2659  ;;  %v6006_v16 = vpack.c.bf16 %v4547_v45, %v4546_v14  ;;  %v4554_v21 = vld [vmem:[%s7874_s4 + $0x1c0] sm:$0xff]  ;;  %v4579_v45 = vld [vmem:[%s7876_s6 + $0x188] sm:$0xff] }
 0x980   : > { %v2666_v25 = vsub.f32 %v2643_v44, %v2660_v24  ;;  %v4548_v44 = vld [vmem:[%s7874_s4 + $0x190] sm:$0xff] }
 0x981   : > { %v2674_v26 = vmul.f32 1.442695, %v2667_v22  ;;  %6007 = vmatprep.subr.bf16.mxu1 %v6006_v16  ;;  %v6010_v17 = vpack.c.bf16 %v4549_v47, %v4548_v44  ;;  %v4555_v22 = vld [vmem:[%s7874_s4 + $0x1c8] sm:$0xff] }
 0x982   : > { %v2672_v27 = vmul.f32 1.442695, %v2666_v25  ;;  %6009 = vmatpush3.bf16.msra.mxu1 %v6006_v16  ;;  %v6022_v24 = vpack.c.bf16 %v4555_v22, %v4554_v21  ;;  %v4556_v25 = vld [vmem:[%s7874_s4 + $0x1d0] sm:$0xff]  ;;  %v4587_v21 = vld [vmem:[%s7876_s6 + $0x1c8] sm:$0xff] }
 0x983   : > { %6324 = vpow2.f32 %v2674_v26  ;;  %6011 = vmatprep.subr.bf16.mxu1 %v6010_v17  ;;  %v4557_v26 = vld [vmem:[%s7874_s4 + $0x1d8] sm:$0xff]  ;;  %v4580_v16 = vld [vmem:[%s7876_s6 + $0x190] sm:$0xff] }
 0x984   : > { %6326 = vpow2.f32 %v2672_v27  ;;  %v6026_v27 = vpack.c.bf16 %v4557_v26, %v4556_v25  ;;  %v6074_v47 = vpack.c.bf16 %v4581_v36, %v4580_v16  ;;  %v4589_v25 = vld [vmem:[%s7876_s6 + $0x1d8] sm:$0xff] }
 0x985   : > { %v6321_v29 = vpop.eup %6320 }
 0x986   : > { %v6323_v56 = vpop.eup %6322  ;;  %v2679_v58 = vsel %vm1076_vm2, %v6321_v29, 0.0  ;;  %6013 = vmatpush3.bf16.msra.mxu1 %v6010_v17  ;;  %v4582_v17 = vld [vmem:[%s7876_s6 + $0x1a0] sm:$0xff] }
 0x987   : > { %2680 = vadd.xlane.f32.xlu1 %v2679_v58  ;;  %v2676_v5 = vsel %vm1076_vm2, %v6323_v56, 0.0  ;;  %6015 = vmatprep.subr.bf16.mxu1 %v6014_v51  ;;  %v6078_v46 = vpack.c.bf16 %v4583_v18, %v4582_v17  ;;  %v4608_v17 = vld [vmem:[%s7877_s7 + $0x70] sm:$0xff]  ;;  %v4609_v18 = vld [vmem:[%s7877_s7 + $0x78] sm:$0xff] }
 0x988   : > { %2677 = vadd.xlane.f32.xlu0 %v2676_v5  ;;  %v4560_v5 = vld [vmem:[%s7874_s4 + $0x1f0] sm:$0xff] }
 0x98a   : > { %6017 = vmatpush3.bf16.msra.mxu1 %v6014_v51  ;;  %v4584_v51 = vld [vmem:[%s7876_s6 + $0x1b0] sm:$0xff] }
 0x98b   : > { %6019 = vmatprep.subr.bf16.mxu1 %v6018_v20  ;;  %v6082_v19 = vpack.c.bf16 %v4585_v37, %v4584_v51 }
 0x98d   : > { %v6325_v30 = vpop.eup %6324 }
 0x98e   : > { %v6327_v31 = vpop.eup %6326  ;;  %v2685_v32 = vsel %vm1076_vm2, %v6325_v30, 0.0  ;;  %6021 = vmatpush3.bf16.msra.mxu1 %v6018_v20  ;;  %v4586_v20 = vld [vmem:[%s7876_s6 + $0x1c0] sm:$0xff] }
 0x98f   : > { %2686 = vadd.xlane.f32.xlu1 %v2685_v32  ;;  %v2682_v33 = vsel %vm1076_vm2, %v6327_v31, 0.0  ;;  %6023 = vmatprep.subr.bf16.mxu1 %v6022_v24  ;;  %v6371_v32 = vld [vmem:[%s6618_s16] sm:$0xff]  ;;  %v6086_v22 = vpack.c.bf16 %v4587_v21, %v4586_v20  ;;  %s4279_s16 = sshll.u32 %s544_s25, 4  ;;  %s7824_s16 = int_to_ptr.vmem [resolvable:$true] %s4279_s16 }
 0x990   : > { %2683 = vadd.xlane.f32.xlu0 %v2682_v33  ;;  %v4564_v33 = vld [vmem:[%s7875_s5 + $0x190] sm:$0xff]  ;;  %s6376_s22 = scalar_lea.vmem %s7824_s16, 512  ;;  %p6383_p0 = scmp.lt.s32.totalorder %s7824_s16, %s6381_s27 }
 0x991   : > { %v6042_v39 = vpack.c.bf16 %v4565_v34, %v4564_v33  ;;  %p6377_p11 = scmp.ne.s32.totalorder %s7824_s16, %s6376_s22  ;;  %p6384_p1 = scmp.lt.s32.totalorder %s6382_s20, %s6376_s22 }
 0x992   : > { %6025 = vmatpush3.bf16.msra.mxu1 %v6022_v24  ;;  %v4588_v24 = vld [vmem:[%s7876_s6 + $0x1d0] sm:$0xff] }
 0x993   : > { %6027 = vmatprep.subr.bf16.mxu1 %v6026_v27  ;;  %v6090_v26 = vpack.c.bf16 %v4589_v25, %v4588_v24  ;;  %p6378_p12 = pnand %p6377_p11, %p6562_p5  ;;  %p6385_p2 = por %p6384_p1, %p6383_p0 }
 0x995   : > { %p6379_p13 = pneg %p6378_p12 }
 0x996   : > { %6029 = vmatpush3.bf16.msra.mxu1 %v6026_v27  ;;  %v4590_v27 = vld [vmem:[%s7876_s6 + $0x1e0] sm:$0xff] }
 0x997   : > { %p6386_p3 = pnand %p6385_p2, %p6379_p13 }
 0xa14   : > { %v2681_v42 = vpop.xlane.xlu1 %2680 }
 0xa15   : > { %6328 = vrcp.f32 %v2681_v42  ;;  %v2678_v43 = vpop.xlane.xlu0 %2677 }
 0xa16   : > { %6330 = vrcp.f32 %v2678_v43 }
 0xa1c   : > { %v2687_v48 = vpop.xlane.xlu1 %2686 }
 0xa1d   : > { %6332 = vrcp.f32 %v2687_v48  ;;  %v2684_v49 = vpop.xlane.xlu0 %2683 }
 0xa1e   : > { %6334 = vrcp.f32 %v2684_v49  ;;  %v4570_v49 = vld [vmem:[%s7875_s5 + $0x1c0] sm:$0xff] }
 0xa1f   : > { %v6329_v50 = vpop.eup %6328 }
 0xa20   : > { %v6331_v54 = vpop.eup %6330  ;;  %v2693_v57 = vmul.f32 %v6329_v50, %v6321_v29  ;;  %v4558_v29 = vld [vmem:[%s7874_s4 + $0x1e0] sm:$0xff]  ;;  %v4571_v50 = vld [vmem:[%s7875_s5 + $0x1c8] sm:$0xff] }
 0xa21   : > { %v2692_v55 = vmul.f32 %v6331_v54, %v6323_v56  ;;  %v4559_v56 = vld [vmem:[%s7874_s4 + $0x1e8] sm:$0xff]  ;;  %v6054_v52 = vpack.c.bf16 %v4571_v50, %v4570_v49  ;;  %v4573_v54 = vld [vmem:[%s7875_s5 + $0x1d8] sm:$0xff] }
 0xa22   : > { %v6030_v58 = vpack.c.bf16 %v4559_v56, %v4558_v29  ;;  %v4591_v29 = vld [vmem:[%s7876_s6 + $0x1e8] sm:$0xff] }
 0xa23   : > { %5454 = vmatprep.mubr.msk.f32.mxu0 %vm1076_vm2, %v2692_v55  ;;  %v6058_v55 = vpack.c.bf16 %v4573_v54, %v4572_v53  ;;  %v6094_v56 = vpack.c.bf16 %v4591_v29, %v4590_v27 }
 0xa24   : > { %5455 = vmatmul.mubr.msk.f32.vlgmr.msra.gmra.mrb[34].mxu0 %vm1076_vm2, %v2693_v57  ;;  %6031 = vmatprep.subr.bf16.mxu1 %v6030_v58  ;;  %v4574_v57 = vld [vmem:[%s7875_s5 + $0x1e0] sm:$0xff] }
 0xa25   : > { %5997 = vmatpush3.bf16.msra.mxu0 %v5994_v41  ;;  %6033 = vmatpush3.bf16.msra.mxu1 %v6030_v58  ;;  %v4569_v41 = vld [vmem:[%s7875_s5 + $0x1b8] sm:$0xff]  ;;  %v4592_v58 = vld [vmem:[%s7876_s6 + $0x1f0] sm:$0xff] }
 0xa26   : > { %5999 = vmatprep.subr.bf16.mxu0 %v5998_v59  ;;  %v6050_v48 = vpack.c.bf16 %v4569_v41, %v4568_v40 }
 0xa27   : > { %v6333_v60 = vpop.eup %6332 }
 0xa28   : > { %v6335_v63 = vpop.eup %6334  ;;  %v2695_v0 = vmul.f32 %v6333_v60, %v6325_v30  ;;  %v4561_v30 = vld [vmem:[%s7874_s4 + $0x1f8] sm:$0xff]  ;;  %v4576_v60 = vld [vmem:[%s7875_s5 + $0x1f0] sm:$0xff] }
 0xa29   : > { %v2694_v23 = vmul.f32 %v6335_v63, %v6327_v31  ;;  %v6034_v31 = vpack.c.bf16 %v4561_v30, %v4560_v5  ;;  %v6066_v62 = vpack.c.bf16 %v4577_v61, %v4576_v60  ;;  %v4593_v5 = vld [vmem:[%s7876_s6 + $0x1f8] sm:$0xff] }
 0xa2a   : > { %v6098_v30 = vpack.c.bf16 %v4593_v5, %v4592_v58  ;;  %v3858_v58 = vld [vmem:[%s7879_s9 + $0x18] sm:$0xff]  ;;  %v3855_v5 = vld [vmem:[%s7879_s9] sm:$0xff] }
 0xa2b   : > { %5461 = vmatprep.mubr.msk.f32.mxu0 %vm1076_vm2, %v2694_v23  ;;  %6035 = vmatprep.subr.bf16.mxu1 %v6034_v31 }
 0xa2c   : > { %5462 = vmatmul.mubr.msk.f32.vlgmr.msra.gmra.mrb[36].mxu0 %vm1076_vm2, %v2695_v0  ;;  %6037 = vmatpush3.bf16.msra.mxu1 %v6034_v31 }
 0xa2d   : > { %6001 = vmatpush3.bf16.msra.mxu0 %v5998_v59 }
 0xa2e   : > { %6003 = vmatprep.subr.bf16.mxu0 %v6002_v2 }
 0xa2f   : > { %5511 = vmatmul.mubr.f32.vlgmr.msra.gmra.mrb[26].mxu1 %v6736_v7  ;;  %v4566_v7 = vld [vmem:[%s7875_s5 + $0x1a0] sm:$0xff] }
 0xa30   : > { %5513 = vmatprep.mubr.f32.mxu1 %v6738_v8  ;;  %v4567_v8 = vld [vmem:[%s7875_s5 + $0x1a8] sm:$0xff] }
 0xa31   : > { %6005 = vmatpush3.bf16.msra.mxu0 %v6002_v2 }
 0xa32   : > { %6039 = vmatprep.subr.bf16.mxu0 %v6038_v13 }
 0xa33   : > { %5514 = vmatmul.mubr.f32.gmra.mrb[28].mxu1 %v6754_v15  ;;  %v6046_v15 = vpack.c.bf16 %v4567_v8, %v4566_v7 }
 0xa34   : > { %5586 = vmatprep.mubr.f32.mxu1 %v6371_v32 }
 0xaf7   : > { %v5456_v35 = vpop.f32.mrb[34].mxu0 }
 0xaf8   : > { %v2768_v38 = vpop.f32.mrb[35].mxu0 }
 0xaf9   : > { %5472 = vmatprep.mubr.msk.f32.mxu0 %vm901_vm0, %v2768_v38 }
 0xafa   : > { %5473 = vmatmul.mubr.msk.f32.vlgmr.msra.gmra.mrb[22].mxu0 %vm901_vm0, %v5456_v35 }
 0xafb   : > { %6041 = vmatpush3.bf16.msra.mxu0 %v6038_v13 }
 0xafc   : > { %6043 = vmatprep.subr.bf16.mxu0 %v6042_v39 }
 0xaff   : > { %6045 = vmatpush3.bf16.msra.mxu0 %v6042_v39  ;;  %v5463_v42 = vpop.f32.mrb[36].mxu0 }
 0xb00   : > { %v2849_v43 = vpop.f32.mrb[37].mxu0  ;;  %6047 = vmatprep.subr.bf16.mxu0 %v6046_v15 }
 0xb01   : > { %5475 = vmatprep.mubr.msk.f32.mxu0 %vm901_vm0, %v2849_v43 }
 0xb02   : > { %5476 = vmatmul.mubr.msk.f32.gmra.mrb[24].mxu0 %vm901_vm0, %v5463_v42  ;;  %v5512_v63 = vpop.f32.mrb[26].mxu1 }
 0xb03   : > { %6049 = vmatpush3.bf16.msra.mxu0 %v6046_v15  ;;  %5548 = vmatprep.mubr.f32.mxu0 %v6642_v28  ;;  %v4575_v28 = vld [vmem:[%s7875_s5 + $0x1e8] sm:$0xff]  ;;  %v3047_v23 = vpop.f32.mrb[27].mxu1 }
 0xb04   : > { %6051 = vmatprep.subr.bf16.mxu0 %v6050_v48  ;;  %v6062_v59 = vpack.c.bf16 %v4575_v28, %v4574_v57 }
 0xb06   : > { %v5515_v0 = vpop.f32.mrb[28].mxu1 }
 0xb07   : > { %6053 = vmatpush3.bf16.msra.mxu0 %v6050_v48  ;;  %v3057_v2 = vpop.f32.mrb[29].mxu1 }
 0xb08   : > { %6055 = vmatprep.subr.bf16.mxu0 %v6054_v52 }
 0xb0b   : > { %6057 = vmatpush3.bf16.msra.mxu0 %v6054_v52 }
 0xb0c   : > { %6059 = vmatprep.subr.bf16.mxu0 %v6058_v55 }
 0xb0f   : > { %6061 = vmatpush3.bf16.msra.mxu0 %v6058_v55 }
 0xb10   : > { %6063 = vmatprep.subr.bf16.mxu0 %v6062_v59 }
 0xb13   : > { %6065 = vmatpush3.bf16.msra.mxu0 %v6062_v59 }
 0xb14   : > { %6067 = vmatprep.subr.bf16.mxu0 %v6066_v62 }
 0xb17   : > { %6069 = vmatpush3.bf16.msra.mxu0 %v6066_v62 }
 0xb1a   : > { %5549 = vmatmul.mubr.f32.vlgmr.msra.gmra.mrb[38].mxu0 %v6721_v1 }
 0xb1b   : > { %5551 = vmatprep.mubr.f32.mxu0 %v6730_v4 }
 0xb1e   : > { %5552 = vmatmul.mubr.f32.gmra.mrb[40].mxu0 %v6744_v12  ;;  %v4578_v12 = vld [vmem:[%s7876_s6 + $0x180] sm:$0xff] }
 0xb1f   : > { %5596 = vmatprep.mubr.msk.f32.mxu0 %vm901_vm0, %v3047_v23  ;;  %v6070_v44 = vpack.c.bf16 %v4579_v45, %v4578_v12  ;;  %v4607_v12 = vld [vmem:[%s7877_s7 + $0x68] sm:$0xff] }
 0xb21   : > { %6071 = vmatprep.subr.bf16.mxu1 %v6070_v44 }
 0xb22   : > { %6073 = vmatpush3.bf16.msra.mxu1 %v6070_v44 }
 0xb23   : > { %6075 = vmatprep.subr.bf16.mxu1 %v6074_v47 }
 0xb26   : > { %6077 = vmatpush3.bf16.msra.mxu1 %v6074_v47 }
 0xb27   : > { %6079 = vmatprep.subr.bf16.mxu1 %v6078_v46 }
 0xb2a   : > { %6081 = vmatpush3.bf16.msra.mxu1 %v6078_v46 }
 0xb2b   : > { %6083 = vmatprep.subr.bf16.mxu1 %v6082_v19 }
 0xb2e   : > { %6085 = vmatpush3.bf16.msra.mxu1 %v6082_v19  ;;  %v6126_v19 = vpack.c.bf16 %v4609_v18, %v4608_v17  ;;  %v3877_v17 = vld [vmem:[%s7879_s9 + $0xb0] sm:$0xff] }
 0xb2f   : > { %6087 = vmatprep.subr.bf16.mxu1 %v6086_v22 }
 0xb32   : > { %6089 = vmatpush3.bf16.msra.mxu1 %v6086_v22 }
 0xb33   : > { %6091 = vmatprep.subr.bf16.mxu1 %v6090_v26 }
 0xb36   : > { %6093 = vmatpush3.bf16.msra.mxu1 %v6090_v26 }
 0xb37   : > { %6095 = vmatprep.subr.bf16.mxu1 %v6094_v56 }
 0xb3a   : > { %6097 = vmatpush3.bf16.msra.mxu1 %v6094_v56  ;;  %v3856_v56 = vld [vmem:[%s7879_s9 + $0x8] sm:$0xff] }
 0xb3b   : > { %6099 = vmatprep.subr.bf16.mxu1 %v6098_v30 }
 0xb3e   : > { %6101 = vmatpush3.bf16.msra.mxu1 %v6098_v30  ;;  %v6130_v30 = vpack.c.bf16 %v3858_v58, %v3856_v56  ;;  %v3824_v56 = vld [vmem:[%s7878_s8 + $0x8] sm:$0xff]  ;;  %v3826_v58 = vld [vmem:[%s7878_s8 + $0x18] sm:$0xff] }
 0xb40   : > { %6131 = vmatprep.subr.bf16.mxu1 %v6130_v30  ;;  %v6162_v30 = vpack.c.bf16 %v3826_v58, %v3824_v56  ;;  %v4614_v56 = vld [vmem:[%s7881_s11] ss:$0 sm:$0xff] }
 0xb41   : > { %5587 = vmatmul.mubr.f32.vlgmr.msra.gmra.mrb[30].mxu1 %v7233_v6 }
 0xb42   : > { %5589 = vmatprep.mubr.f32.mxu1 %v7237_v9 }
 0xb45   : > { %5590 = vmatmul.mubr.f32.gmra.mrb[32].mxu1 %v7241_v10 }
 0xbed   : > { %v5550_v3 = vpop.f32.mrb[38].mxu0 }
 0xbee   : > { %v3149_v11 = vpop.f32.mrb[39].mxu0 }
 0xbef   : > { %v6102_v13 = vpack.c.bf16 %v5550_v3, %v3149_v11 }
 0xbf1   : > { %6104 = vmatprep.subr.msk.bf16.mxu0 %vm6795_vm1, %v6102_v13  ;;  %v5553_v14 = vpop.f32.mrb[40].mxu0 }
 0xbf2   : > { %6107 = vmatpush3.bf16.xpose.msk.msra.mxu0 %vm6795_vm1, %v6102_v13  ;;  %v3159_v1 = vpop.f32.mrb[41].mxu0 }
 0xbf3   : > { %v6108_v4 = vpack.c.bf16 %v5553_v14, %v3159_v1 }
 0xbf5   : > { %6110 = vmatprep.subr.msk.bf16.mxu0 %vm6795_vm1, %v6108_v4 }
 0xbf9   : > { %5597 = vmatmul.mubr.msk.f32.vlgmr.msra.gmra.mrb[42].mxu0 %vm901_vm0, %v5512_v63 }
 0xbfa   : > { %6113 = vmatpush3.bf16.xpose.msk.msra.mxu0 %vm6795_vm1, %v6108_v4  ;;  %5603 = vmatprep.mubr.msk.f32.mxu0 %vm901_vm0, %v3057_v2  ;;  %v4606_v4 = vld [vmem:[%s7877_s7 + $0x60] sm:$0xff] }
 0xbfb   : > { %v6122_v36 = vpack.c.bf16 %v4607_v12, %v4606_v4  ;;  %v3871_v4 = vld [vmem:[%s7879_s9 + $0x80] sm:$0xff]  ;;  %v3873_v12 = vld [vmem:[%s7879_s9 + $0x90] sm:$0xff] }
 0xc01   : > { %5604 = vmatmul.mubr.msk.f32.vlgmr.msra.gmra.mrb[44].mxu0 %vm901_vm0, %v5515_v0 }
 0xc14   : > { %v5588_v61 = vpop.f32.mrb[30].mxu1 }
 0xc15   : > { %v3251_v62 = vpop.f32.mrb[31].mxu1 }
 0xc16   : > { %v6114_v63 = vpack.c.bf16 %v5588_v61, %v3251_v62 }
 0xc18   : > { %6115 = vmatprep.subr.bf16.mxu0 %v6114_v63  ;;  %v5591_v23 = vpop.f32.mrb[32].mxu1 }
 0xc19   : > { %6117 = vmatpush3.bf16.msra.mxu0 %v6114_v63  ;;  %v3261_v0 = vpop.f32.mrb[33].mxu1  ;;  %v3868_v63 = vld [vmem:[%s7879_s9 + $0x68] sm:$0xff] }
 0xc1a   : > { %v6118_v2 = vpack.c.bf16 %v5591_v23, %v3261_v0  ;;  %v3870_v23 = vld [vmem:[%s7879_s9 + $0x78] sm:$0xff] }
 0xc1b   : > { %v6142_v0 = vpack.c.bf16 %v3870_v23, %v3868_v63  ;;  %v4081_v23 = vld [vmem:[%s7880_s10 + $0x40] sm:$0xff] }
 0xc1c   : > { %6119 = vmatprep.subr.bf16.mxu0 %v6118_v2 }
 0xccc   : > { %v5598_v31 = vpop.f32.mrb[42].mxu0 }
 0xccd   : > { %v3348_v32 = vpop.f32.mrb[43].mxu0  ;;  %v3447_v33 = vsel %vm1076_vm2, %v5598_v31, -inf }
 0xcce   : > { %3448 = vmax.xlane.f32.xlu1 %v3447_v33  ;;  %v3444_v34 = vsel %vm1076_vm2, %v3348_v32, -inf  ;;  %v3862_v33 = vld [vmem:[%s7879_s9 + $0x38] sm:$0xff] }
 0xccf   : > { %3445 = vmax.xlane.f32.xlu0 %v3444_v34 }
 0xcd4   : > { %v5605_v35 = vpop.f32.mrb[44].mxu0 }
 0xcd5   : > { %v3435_v38 = vpop.f32.mrb[45].mxu0  ;;  %v3453_v39 = vsel %vm1076_vm2, %v5605_v35, -inf }
 0xcd6   : > { %3454 = vmax.xlane.f32.xlu1 %v3453_v39  ;;  %v3450_v7 = vsel %vm1076_vm2, %v3435_v38, -inf  ;;  %v3861_v39 = vld [vmem:[%s7879_s9 + $0x30] sm:$0xff] }
 0xcd7   : > { %3451 = vmax.xlane.f32.xlu0 %v3450_v7  ;;  %v3864_v7 = vld [vmem:[%s7879_s9 + $0x48] sm:$0xff] }
 0xd5b   : > { %v3449_v6 = vpop.xlane.xlu1 %3448 }
 0xd5c   : > { %v3457_v9 = vsub.f32 %v5598_v31, %v3449_v6  ;;  %v3446_v8 = vpop.xlane.xlu0 %3445  ;;  %v3857_v31 = vld [vmem:[%s7879_s9 + $0x10] sm:$0xff]  ;;  %v3866_v6 = vld [vmem:[%s7879_s9 + $0x58] sm:$0xff] }
 0xd5d   : > { %v3456_v10 = vsub.f32 %v3348_v32, %v3446_v8  ;;  %v3860_v32 = vld [vmem:[%s7879_s9 + $0x28] sm:$0xff]  ;;  %v6132_v34 = vpack.c.bf16 %v3857_v31, %v3855_v5  ;;  %v6138_v8 = vpack.c.bf16 %v3866_v6, %v3864_v7  ;;  %v6440_v5 = vmov 0.0   ;;  %v4089_v31 = vld [vmem:[%s7880_s10 + $0x80] sm:$0xff] }
 0xd5e   : > { %v3462_v15 = vmul.f32 1.442695, %v3457_v9  ;;  %3951 = vmatprep.mubr.f32.mxu1 %v6440_v5 }
 0xd5f   : > { %v3460_v40 = vmul.f32 1.442695, %v3456_v10  ;;  %6133 = vmatpush1.bf16.msra.mxu1 %v6132_v34  ;;  %v3863_v10 = vld [vmem:[%s7879_s9 + $0x40] sm:$0xff] }
 0xd60   : > { %6336 = vpow2.f32 %v3462_v15  ;;  %v3865_v15 = vld [vmem:[%s7879_s9 + $0x50] sm:$0xff] }
 0xd61   : > { %6338 = vpow2.f32 %v3460_v40  ;;  %v6140_v40 = vpack.c.bf16 %v3865_v15, %v3863_v10  ;;  %v4093_v10 = vld [vmem:[%s7880_s10 + $0xa0] sm:$0xff]  ;;  %v4094_v15 = vld [vmem:[%s7880_s10 + $0xa8] sm:$0xff] }
 0xd63   : > { %v3455_v41 = vpop.xlane.xlu1 %3454 }
 0xd64   : > { %v3459_v42 = vsub.f32 %v5605_v35, %v3455_v41  ;;  %v3452_v43 = vpop.xlane.xlu0 %3451  ;;  %v6134_v35 = vpack.c.bf16 %v3862_v33, %v3860_v32  ;;  %v4090_v32 = vld [vmem:[%s7880_s10 + $0x88] sm:$0xff]  ;;  %v4073_v33 = vld [vmem:[%s7880_s10] sm:$0xff] }
 0xd65   : > { %v3458_v48 = vsub.f32 %v3435_v38, %v3452_v43  ;;  %v3859_v38 = vld [vmem:[%s7879_s9 + $0x20] sm:$0xff]  ;;  %v6194_v34 = vpack.c.bf16 %v4090_v32, %v4089_v31  ;;  %v3825_v31 = vld [vmem:[%s7878_s8 + $0x10] sm:$0xff] }
 0xd66   : > { %v3466_v49 = vmul.f32 1.442695, %v3459_v42  ;;  %v6136_v9 = vpack.c.bf16 %v3861_v39, %v3859_v38  ;;  %6135 = vmatprep.subr.bf16.mxu1 %v6134_v35  ;;  %v4074_v35 = vld [vmem:[%s7880_s10 + $0x8] sm:$0xff]  ;;  %v4091_v38 = vld [vmem:[%s7880_s10 + $0x90] sm:$0xff]  ;;  %v4092_v39 = vld [vmem:[%s7880_s10 + $0x98] sm:$0xff] }
 0xd67   : > { %v3464_v50 = vmul.f32 1.442695, %v3458_v48  ;;  %v6196_v7 = vpack.c.bf16 %v4074_v35, %v4073_v33  ;;  %v6198_v6 = vpack.c.bf16 %v4092_v39, %v4091_v38  ;;  %v4615_v33 = vld [vmem:[%s7882_s12] ss:$0 sm:$0xff] }
 0xd68   : > { %6340 = vpow2.f32 %v3466_v49  ;;  %6137 = vmatpush1.bf16.msra.mxu1 %v6136_v9  ;;  %v4075_v9 = vld [vmem:[%s7880_s10 + $0x10] sm:$0xff] }
 0xd69   : > { %6342 = vpow2.f32 %v3464_v50  ;;  %6139 = vmatprep.subr.bf16.mxu1 %v6138_v8  ;;  %v4076_v8 = vld [vmem:[%s7880_s10 + $0x18] sm:$0xff] }
 0xd6a   : > { %v6337_v52 = vpop.eup %6336 }
 0xd6b   : > { %v6339_v53 = vpop.eup %6338  ;;  %v3471_v54 = vsel %vm1076_vm2, %v6337_v52, 0.0 }
 0xd6c   : > { %3472 = vadd.xlane.f32.xlu1 %v3471_v54  ;;  %v3468_v55 = vsel %vm1076_vm2, %v6339_v53, 0.0  ;;  %6141 = vmatpush1.bf16.msra.mxu1 %v6140_v40  ;;  %v6200_v40 = vpack.c.bf16 %v4076_v8, %v4075_v9  ;;  %v3829_v9 = vld [vmem:[%s7878_s8 + $0x30] sm:$0xff]  ;;  %v3832_v8 = vld [vmem:[%s7878_s8 + $0x48] sm:$0xff] }
 0xd6d   : > { %3469 = vadd.xlane.f32.xlu0 %v3468_v55  ;;  %6143 = vmatprep.subr.bf16.mxu1 %v6142_v0  ;;  %v4082_v0 = vld [vmem:[%s7880_s10 + $0x48] sm:$0xff] }
 0xd72   : > { %v6341_v57 = vpop.eup %6340 }
 0xd73   : > { %v6343_v28 = vpop.eup %6342  ;;  %v3477_v59 = vsel %vm1076_vm2, %v6341_v57, 0.0 }
 0xd74   : > { %3478 = vadd.xlane.f32.xlu1 %v3477_v59  ;;  %v3474_v60 = vsel %vm1076_vm2, %v6343_v28, 0.0 }
 0xd75   : > { %3475 = vadd.xlane.f32.xlu0 %v3474_v60 }
 0xdf9   : > { %v3473_v3 = vpop.xlane.xlu1 %3472 }
 0xdfa   : > { %6344 = vrcp.f32 %v3473_v3  ;;  %v3470_v11 = vpop.xlane.xlu0 %3469  ;;  %v3869_v3 = vld [vmem:[%s7879_s9 + $0x70] sm:$0xff] }
 0xdfb   : > { %6346 = vrcp.f32 %v3470_v11 }
 0xe01   : > { %v3479_v13 = vpop.xlane.xlu1 %3478 }
 0xe02   : > { %6348 = vrcp.f32 %v3479_v13  ;;  %v3476_v14 = vpop.xlane.xlu0 %3475  ;;  %v3872_v13 = vld [vmem:[%s7879_s9 + $0x88] sm:$0xff] }
 0xe03   : > { %6350 = vrcp.f32 %v3476_v14  ;;  %v3874_v14 = vld [vmem:[%s7879_s9 + $0x98] sm:$0xff] }
 0xe04   : > { %v6345_v1 = vpop.eup %6344 }
 0xe05   : > { %v6347_v45 = vpop.eup %6346  ;;  %v3485_v44 = vmul.f32 %v6345_v1, %v6337_v52  ;;  %v6146_v1 = vpack.c.bf16 %v3874_v14, %v3872_v13  ;;  %v4083_v14 = vld [vmem:[%s7880_s10 + $0x50] sm:$0xff] }
 0xe06   : > { %v3484_v16 = vmul.f32 %v6347_v45, %v6339_v53  ;;  %v6148_v45 = vpack.c.bf16 %v3873_v12, %v3871_v4  ;;  %v4101_v4 = vld [vmem:[%s7880_s10 + $0xe0] sm:$0xff]  ;;  %v4102_v12 = vld [vmem:[%s7880_s10 + $0xe8] sm:$0xff] }
 0xe08   : > { %5610 = vmatprep.mubr.msk.f32.mxu0 %vm1076_vm2, %v3484_v16  ;;  %v3876_v16 = vld [vmem:[%s7879_s9 + $0xa8] sm:$0xff] }
 0xe09   : > { %5611 = vmatmul.mubr.msk.f32.vlgmr.msra.gmra.mrb[46].mxu0 %vm1076_vm2, %v3485_v44  ;;  %v3878_v44 = vld [vmem:[%s7879_s9 + $0xb8] sm:$0xff] }
 0xe0a   : > { %6121 = vmatpush3.bf16.msra.mxu0 %v6118_v2  ;;  %v3867_v2 = vld [vmem:[%s7879_s9 + $0x60] sm:$0xff] }
 0xe0b   : > { %6123 = vmatprep.subr.bf16.mxu0 %v6122_v36  ;;  %v6144_v11 = vpack.c.bf16 %v3869_v3, %v3867_v2  ;;  %v4099_v2 = vld [vmem:[%s7880_s10 + $0xd0] sm:$0xff]  ;;  %v4100_v3 = vld [vmem:[%s7880_s10 + $0xd8] sm:$0xff] }
 0xe0c   : > { %v6349_v47 = vpop.eup %6348  ;;  %v6214_v13 = vpack.c.bf16 %v4100_v3, %v4099_v2  ;;  %v3842_v2 = vld [vmem:[%s7878_s8 + $0x98] sm:$0xff] }
 0xe0d   : > { %v6351_v46 = vpop.eup %6350  ;;  %v3487_v37 = vmul.f32 %v6349_v47, %v6341_v57  ;;  %6145 = vmatpush1.bf16.msra.mxu1 %v6144_v11  ;;  %v3875_v47 = vld [vmem:[%s7879_s9 + $0xa0] sm:$0xff]  ;;  %v6212_v11 = vpack.c.bf16 %v4082_v0, %v4081_v23  ;;  %v3837_v23 = vld [vmem:[%s7878_s8 + $0x70] sm:$0xff]  ;;  %v3840_v0 = vld [vmem:[%s7878_s8 + $0x88] sm:$0xff] }
 0xe0e   : > { %v3486_v51 = vmul.f32 %v6351_v46, %v6343_v28  ;;  %6147 = vmatprep.subr.bf16.mxu1 %v6146_v1  ;;  %v6152_v18 = vpack.c.bf16 %v3877_v17, %v3875_v47  ;;  %v3880_v46 = vld [vmem:[%s7879_s9 + $0xc8] sm:$0xff]  ;;  %v4084_v1 = vld [vmem:[%s7880_s10 + $0x58] sm:$0xff] }
 0xe10   : > { %5617 = vmatprep.mubr.msk.f32.mxu0 %vm1076_vm2, %v3486_v51  ;;  %v3882_v51 = vld [vmem:[%s7879_s9 + $0xd8] sm:$0xff] }
 0xe11   : > { %5618 = vmatmul.mubr.msk.f32.vlgmr.msra.gmra.mrb[48].mxu0 %vm1076_vm2, %v3487_v37  ;;  %6149 = vmatpush1.bf16.msra.mxu1 %v6148_v45  ;;  %v6154_v37 = vpack.c.bf16 %v3882_v51, %v3880_v46  ;;  %v6216_v45 = vpack.c.bf16 %v4084_v1, %v4083_v14  ;;  %v3839_v14 = vld [vmem:[%s7878_s8 + $0x80] sm:$0xff]  ;;  %v3841_v1 = vld [vmem:[%s7878_s8 + $0x90] sm:$0xff] }
 0xe12   : > { %6125 = vmatpush3.bf16.msra.mxu0 %v6122_v36  ;;  %v6150_v36 = vpack.c.bf16 %v3878_v44, %v3876_v16  ;;  %v6218_v16 = vpack.c.bf16 %v4102_v12, %v4101_v4  ;;  %v4085_v44 = vld [vmem:[%s7880_s10 + $0x60] sm:$0xff]  ;;  %v3844_v4 = vld [vmem:[%s7878_s8 + $0xa8] sm:$0xff]  ;;  %v3846_v12 = vld [vmem:[%s7878_s8 + $0xb8] sm:$0xff] }
 0xe13   : > { %6127 = vmatprep.subr.bf16.mxu0 %v6126_v19 }
 0xe14   : > { %6151 = vmatprep.subr.bf16.mxu1 %v6150_v36  ;;  %v4086_v36 = vld [vmem:[%s7880_s10 + $0x68] sm:$0xff] }
 0xe15   : > { %6153 = vmatpush1.bf16.msra.mxu1 %v6152_v18  ;;  %v6220_v47 = vpack.c.bf16 %v4086_v36, %v4085_v44  ;;  %v3843_v44 = vld [vmem:[%s7878_s8 + $0xa0] sm:$0xff]  ;;  %v3845_v36 = vld [vmem:[%s7878_s8 + $0xb0] sm:$0xff] }
 0xe16   : > { %6129 = vmatpush3.bf16.msra.mxu0 %v6126_v19  ;;  %v3879_v19 = vld [vmem:[%s7879_s9 + $0xc0] sm:$0xff]  ;;  %6155 = vmatprep.subr.bf16.mxu1 %v6154_v37 }
 0xe17   : > { %6195 = vmatprep.subr.bf16.mxu0 %v6194_v34  ;;  %v3828_v34 = vld [vmem:[%s7878_s8 + $0x28] sm:$0xff] }
 0xedc   : > { %v5612_v20 = vpop.f32.mrb[46].mxu0 }
 0xedd   : > { %v3560_v21 = vpop.f32.mrb[47].mxu0 }
 0xede   : > { %5628 = vmatprep.mubr.msk.f32.mxu0 %vm901_vm0, %v3560_v21 }
 0xedf   : > { %5629 = vmatmul.mubr.msk.f32.vlgmr.msra.gmra.mrb[22].mxu0 %vm901_vm0, %v5612_v20  ;;  %v3881_v20 = vld [vmem:[%s7879_s9 + $0xd0] sm:$0xff] }
 0xee0   : > { %v6156_v21 = vpack.c.bf16 %v3881_v20, %v3879_v19  ;;  %6197 = vmatpush3.bf16.msra.mxu0 %v6196_v7 }
 0xee1   : > { %6199 = vmatprep.subr.bf16.mxu0 %v6198_v6 }
 0xee2   : > { %6157 = vmatpush1.bf16.msra.mxu1 %v6156_v21 }
 0xee4   : > { %v5619_v22 = vpop.f32.mrb[48].mxu0  ;;  %6201 = vmatpush3.bf16.msra.mxu0 %v6200_v40 }
 0xee5   : > { %v3641_v24 = vpop.f32.mrb[49].mxu0 }
 0xee6   : > { %5631 = vmatprep.mubr.msk.f32.mxu0 %vm901_vm0, %v3641_v24  ;;  %v3886_v24 = vld [vmem:[%s7879_s9 + $0xf8] sm:$0xff] }
 0xee7   : > { %5632 = vmatmul.mubr.msk.f32.gmra.mrb[24].mxu0 %vm901_vm0, %v5619_v22  ;;  %v3884_v22 = vld [vmem:[%s7879_s9 + $0xe8] sm:$0xff] }
 0xfb2   : > { %v5630_v25 = vpop.f32.mrb[22].mxu0 }
 0xfb3   : > { %3758 = vadd.xlane.f32.xlu1 %v5630_v25  ;;  %v3733_v26 = vpop.f32.mrb[23].mxu0 }
 0xfb4   : > { %3756 = vadd.xlane.f32.xlu0 %v3733_v26 }
 0xfba   : > { %v5633_v27 = vpop.f32.mrb[24].mxu0 }
 0xfbb   : > { %3762 = vadd.xlane.f32.xlu1 %v5633_v27  ;;  %v3743_v29 = vpop.f32.mrb[25].mxu0 }
 0xfbc   : > { %3760 = vadd.xlane.f32.xlu0 %v3743_v29 }
0x1040   : > { %v3759_v41 = vpop.xlane.xlu1 %3758 }
0x1041   : > { %v3766_v42 = vmul.f32 0.0078125, %v3759_v41  ;;  %v3757_v43 = vpop.xlane.xlu0 %3756  ;;  %v6202_v41 = vpack.c.bf16 %v4094_v15, %v4093_v10  ;;  %v3834_v10 = vld [vmem:[%s7878_s8 + $0x58] sm:$0xff] }
0x1042   : > { %v3765_v48 = vmul.f32 0.0078125, %v3757_v43  ;;  %v4078_v43 = vld [vmem:[%s7880_s10 + $0x28] sm:$0xff] }
0x1043   : > { %v7504_v49 = vsub.f32 %v5630_v25, %v3766_v42  ;;  %v6158_v25 = vpack.c.bf16 %v3886_v24, %v3884_v22  ;;  %v4077_v42 = vld [vmem:[%s7880_s10 + $0x20] sm:$0xff]  ;;  %6203 = vmatprep.subr.bf16.mxu0 %v6202_v41 }
0x1044   : > { %v7506_v50 = vsub.f32 %v3733_v26, %v3765_v48  ;;  %v3883_v26 = vld [vmem:[%s7879_s9 + $0xe0] sm:$0xff]  ;;  %v4095_v48 = vld [vmem:[%s7880_s10 + $0xb0] sm:$0xff] }
0x1045   : > { %v3774_v52 = vmul.f32 %v7504_v49, %v7504_v49  ;;  %6159 = vmatprep.subr.bf16.mxu1 %v6158_v25 }
0x1046   : > { %v3773_v53 = vmul.f32 %v7506_v50, %v7506_v50 }
0x1047   : > { %3779 = vadd.xlane.f32.xlu1 %v3774_v52  ;;  %v4096_v52 = vld [vmem:[%s7880_s10 + $0xb8] sm:$0xff] }
0x1048   : > { %v3763_v54 = vpop.xlane.xlu1 %3762  ;;  %3777 = vadd.xlane.f32.xlu0 %v3773_v53  ;;  %v6204_v53 = vpack.c.bf16 %v4078_v43, %v4077_v42  ;;  %v6170_v43 = vpack.c.bf16 %v3834_v10, %v3832_v8 }
0x1049   : > { %v3768_v55 = vmul.f32 0.0078125, %v3763_v54  ;;  %v3761_v57 = vpop.xlane.xlu0 %3760  ;;  %v6206_v54 = vpack.c.bf16 %v4096_v52, %v4095_v48  ;;  %v3831_v52 = vld [vmem:[%s7878_s8 + $0x40] sm:$0xff] }
0x104a   : > { %v3767_v28 = vmul.f32 0.0078125, %v3761_v57  ;;  %v4080_v57 = vld [vmem:[%s7880_s10 + $0x38] sm:$0xff]  ;;  %6205 = vmatpush3.bf16.msra.mxu0 %v6204_v53  ;;  %v3833_v53 = vld [vmem:[%s7878_s8 + $0x50] sm:$0xff] }
0x104b   : > { %v7512_v59 = vsub.f32 %v5633_v27, %v3768_v55  ;;  %v3885_v27 = vld [vmem:[%s7879_s9 + $0xf0] sm:$0xff]  ;;  %6207 = vmatprep.subr.bf16.mxu0 %v6206_v54 }
0x104c   : > { %v7514_v60 = vsub.f32 %v3743_v29, %v3767_v28  ;;  %v6160_v29 = vpack.c.bf16 %v3885_v27, %v3883_v26  ;;  %v4079_v55 = vld [vmem:[%s7880_s10 + $0x30] sm:$0xff]  ;;  %v4097_v28 = vld [vmem:[%s7880_s10 + $0xc0] sm:$0xff] }
0x104d   : > { %v3776_v61 = vmul.f32 %v7512_v59, %v7512_v59 }
0x104e   : > { %v3775_v62 = vmul.f32 %v7514_v60, %v7514_v60  ;;  %6161 = vmatpush1.bf16.msra.mxu1 %v6160_v29 }
0x104f   : > { %3783 = vadd.xlane.f32.xlu1 %v3776_v61  ;;  %6163 = vmatprep.subr.bf16.mxu1 %v6162_v30  ;;  %v4098_v61 = vld [vmem:[%s7880_s10 + $0xc8] sm:$0xff]  ;;  %v3823_v30 = vld [vmem:[%s7878_s8] sm:$0xff] }
0x1050   : > { %3781 = vadd.xlane.f32.xlu0 %v3775_v62  ;;  %v6208_v62 = vpack.c.bf16 %v4080_v57, %v4079_v55  ;;  %v6210_v63 = vpack.c.bf16 %v4098_v61, %v4097_v28  ;;  %v6164_v38 = vpack.c.bf16 %v3825_v31, %v3823_v30  ;;  %v3836_v55 = vld [vmem:[%s7878_s8 + $0x68] sm:$0xff]  ;;  %v3838_v57 = vld [vmem:[%s7878_s8 + $0x78] sm:$0xff]  ;;  %v6172_v28 = vpack.c.bf16 %v3833_v53, %v3831_v52  ;;  %v4103_v30 = vld [vmem:[%s7880_s10 + $0xf0] sm:$0xff] }
0x1051   : > { %v4104_v31 = vld [vmem:[%s7880_s10 + $0xf8] sm:$0xff] }
0x1052   : > { %6209 = vmatpush3.bf16.msra.mxu0 %v6208_v62  ;;  %v6174_v62 = vpack.c.bf16 %v3838_v57, %v3836_v55 }
0x1053   : > { %6211 = vmatprep.subr.bf16.mxu0 %v6210_v63 }
0x1056   : > { %6213 = vmatpush3.bf16.msra.mxu0 %v6212_v11 }
0x1057   : > { %6215 = vmatprep.subr.bf16.mxu0 %v6214_v13  ;;  %v6178_v13 = vpack.c.bf16 %v3842_v2, %v3840_v0 }
0x105a   : > { %6217 = vmatpush3.bf16.msra.mxu0 %v6216_v45  ;;  %v6180_v45 = vpack.c.bf16 %v3841_v1, %v3839_v14 }
0x105b   : > { %6219 = vmatprep.subr.bf16.mxu0 %v6218_v16  ;;  %v6182_v16 = vpack.c.bf16 %v3846_v12, %v3844_v4 }
0x105e   : > { %6221 = vmatpush3.bf16.msra.mxu0 %v6220_v47  ;;  %v3848_v47 = vld [vmem:[%s7878_s8 + $0xc8] sm:$0xff] }
0x10d4   : > { %v3780_v17 = vpop.xlane.xlu1 %3779 }
0x10d5   : > { %v3786_v18 = vmul.f32 0.0078125, %v3780_v17  ;;  %v3778_v46 = vpop.xlane.xlu0 %3777  ;;  %v3850_v17 = vld [vmem:[%s7878_s8 + $0xd8] sm:$0xff] }
0x10d6   : > { %v3785_v51 = vmul.f32 0.0078125, %v3778_v46  ;;  %v6186_v46 = vpack.c.bf16 %v3850_v17, %v3848_v47 }
0x10d7   : > { %v3790_v37 = vadd.f32 1e-05, %v3786_v18  ;;  %v6184_v18 = vpack.c.bf16 %v3845_v36, %v3843_v44 }
0x10d8   : > { %v3789_v19 = vadd.f32 1e-05, %v3785_v51  ;;  %v3847_v51 = vld [vmem:[%s7878_s8 + $0xc0] sm:$0xff] }
0x10d9   : > { %6352 = vrsqrt.f32 %v3790_v37  ;;  %v3849_v37 = vld [vmem:[%s7878_s8 + $0xd0] sm:$0xff] }
0x10da   : > { %6354 = vrsqrt.f32 %v3789_v19  ;;  %v3852_v19 = vld [vmem:[%s7878_s8 + $0xe8] sm:$0xff] }
0x10dc   : > { %v3784_v20 = vpop.xlane.xlu1 %3783 }
0x10dd   : > { %v3788_v21 = vmul.f32 0.0078125, %v3784_v20  ;;  %v3782_v22 = vpop.xlane.xlu0 %3781  ;;  %v3854_v20 = vld [vmem:[%s7878_s8 + $0xf8] sm:$0xff] }
0x10de   : > { %v3787_v24 = vmul.f32 0.0078125, %v3782_v22  ;;  %v6190_v22 = vpack.c.bf16 %v3854_v20, %v3852_v19 }
0x10df   : > { %v3792_v25 = vadd.f32 1e-05, %v3788_v21  ;;  %v6188_v21 = vpack.c.bf16 %v3849_v37, %v3847_v51 }
0x10e0   : > { %v3791_v26 = vadd.f32 1e-05, %v3787_v24  ;;  %v3851_v24 = vld [vmem:[%s7878_s8 + $0xe0] sm:$0xff] }
0x10e1   : > { %6356 = vrsqrt.f32 %v3792_v25  ;;  %v3853_v25 = vld [vmem:[%s7878_s8 + $0xf0] sm:$0xff] }
0x10e2   : > { %6358 = vrsqrt.f32 %v3791_v26  ;;  %v6192_v26 = vpack.c.bf16 %v3853_v25, %v3851_v24 }
0x10e3   : > { %v6353_v27 = vpop.eup %6352 }
0x10e4   : > { %v6355_v29 = vpop.eup %6354  ;;  %v3798_v32 = vmul.f32 %v6353_v27, %v7504_v49  ;;  %v3827_v49 = vld [vmem:[%s7878_s8 + $0x20] sm:$0xff] }
0x10e5   : > { %v3797_v58 = vmul.f32 %v6355_v29, %v7506_v50  ;;  %v3830_v50 = vld [vmem:[%s7878_s8 + $0x38] sm:$0xff]  ;;  %v6168_v41 = vpack.c.bf16 %v3829_v9, %v3827_v49  ;;  %v7776_v27 = vld [vmem:[%s6647_s17] sm:$0xff]  ;;  %v7781_v29 = vld [vmem:[%s6647_s17 + $0x8] sm:$0xff] }
0x10e6   : > { %v6166_v7 = vpack.c.bf16 %v3830_v50, %v3828_v34  ;;  %v3809_v6 = vmul.f32 %v4614_v56, %v3798_v32  ;;  %v6222_v32 = vpack.c.bf16 %v4104_v31, %v4103_v30 }
0x10e7   : > { %v3808_v35 = vmul.f32 %v4614_v56, %v3797_v58  ;;  %v7791_v58 = vld [vmem:[%s6647_s17 + $0x18] sm:$0xff] }
0x10e8   : > { %v3820_v42 = vadd.f32 %v4615_v33, %v3809_v6  ;;  %6223 = vmatprep.subr.bf16.mxu0 %v6222_v32  ;;  %v4616_v32 = vld [vmem:[%s7883_s13] ss:$0 sm:$0xff] }
0x10e9   : > { %v3819_v39 = vadd.f32 %v4615_v33, %v3808_v35 }
0x10eb   : > { %v6357_v15 = vpop.eup %6356  ;;  %3952 = vmatmul.mubr.f32.vlgmr.msra.gmra.mrb[34].mxu1 %v3819_v39 }
0x10ec   : > { %v6359_v40 = vpop.eup %6358  ;;  %6165 = vmatpush1.bf16.msra.mxu1 %v6164_v38  ;;  %3957 = vmatprep.mubr.f32.mxu1 %v6440_v5  ;;  %v3800_v54 = vmul.f32 %v6357_v15, %v7512_v59  ;;  %v3835_v59 = vld [vmem:[%s7878_s8 + $0x60] sm:$0xff] }
0x10ed   : > { %6167 = vmatprep.subr.bf16.mxu1 %v6166_v7  ;;  %v3799_v48 = vmul.f32 %v6359_v40, %v7514_v60  ;;  %v6176_v3 = vpack.c.bf16 %v3837_v23, %v3835_v59 }
0x10ee   : > { %v3811_v63 = vmul.f32 %v4614_v56, %v3800_v54 }
0x10ef   : > { %3958 = vmatmul.mubr.f32.gmra.mrb[36].mxu1 %v3820_v42  ;;  %v3810_v60 = vmul.f32 %v4614_v56, %v3799_v48  ;;  %v7786_v56 = vld [vmem:[%s6647_s17 + $0x10] sm:$0xff]  ;;  %s7829_s17 = scalar_lea.sflag [#allocation3], %s542_s29 }
0x10f0   : > { %6169 = vmatpush1.bf16.msra.mxu1 %v6168_v41  ;;  %3963 = vmatprep.mubr.f32.mxu1 %v6440_v5  ;;  %v3822_v11 = vadd.f32 %v4615_v33, %v3811_v63 }
0x10f1   : > { %6171 = vmatprep.subr.bf16.mxu1 %v6170_v43  ;;  %v3821_v61 = vadd.f32 %v4615_v33, %v3810_v60  ;;  %v4087_v33 = vld [vmem:[%s7880_s10 + $0x70] sm:$0xff] }
0x10f3   : > { %3964 = vmatmul.mubr.f32.gmra.mrb[38].mxu1 %v3821_v61 }
0x10f4   : > { %6173 = vmatpush1.bf16.msra.mxu1 %v6172_v28  ;;  %3969 = vmatprep.mubr.f32.mxu1 %v6440_v5 }
0x10f5   : > { %6175 = vmatprep.subr.bf16.mxu1 %v6174_v62 }
0x10f7   : > { %3970 = vmatmul.mubr.f32.gmra.mrb[40].mxu1 %v3822_v11 }
0x10f8   : > { %6177 = vmatpush1.bf16.msra.mxu1 %v6176_v3  ;;  %4040 = vmatprep.mubr.f32.mxu1 %v6440_v5 }
0x10f9   : > { %6179 = vmatprep.subr.bf16.mxu1 %v6178_v13 }
0x10fc   : > { %6181 = vmatpush1.bf16.msra.mxu1 %v6180_v45 }
0x10fd   : > { %6183 = vmatprep.subr.bf16.mxu1 %v6182_v16 }
0x1100   : > { %6185 = vmatpush1.bf16.msra.mxu1 %v6184_v18 }
0x1101   : > { %6187 = vmatprep.subr.bf16.mxu1 %v6186_v46 }
0x1104   : > { %6189 = vmatpush1.bf16.msra.mxu1 %v6188_v21 }
0x1105   : > { %6191 = vmatprep.subr.bf16.mxu1 %v6190_v22 }
0x1108   : > { %6193 = vmatpush1.bf16.msra.mxu1 %v6192_v26 }
0x110b   : > { %4041 = vmatmul.mubr.f32.vlgmr.msra.gmra.mrb[34].mxu1 %v7776_v27 }
0x110c   : > { %4046 = vmatprep.mubr.f32.mxu1 %v6440_v5 }
0x110f   : > { %4047 = vmatmul.mubr.f32.gmra.mrb[36].mxu1 %v7781_v29 }
0x1110   : > { %4052 = vmatprep.mubr.f32.mxu1 %v6440_v5 }
0x1113   : > { %4053 = vmatmul.mubr.f32.gmra.mrb[38].mxu1 %v7786_v56 }
0x1114   : > { %4058 = vmatprep.mubr.f32.mxu1 %v6440_v5  ;;  %v4088_v5 = vld [vmem:[%s7880_s10 + $0x78] sm:$0xff] }
0x1115   : > { %v6224_v34 = vpack.c.bf16 %v4088_v5, %v4087_v33 }
0x1117   : > { %4059 = vmatmul.mubr.f32.gmra.mrb[40].mxu1 %v7791_v58  ;;  %6225 = vmatpush3.bf16.msra.mxu0 %v6224_v34  ;;  %v4617_v34 = vld [vmem:[%s7884_s14] ss:$0 sm:$0xff] }
0x11de   : > { %v4042_v50 = vpop.f32.mrb[34].mxu1 }
0x11df   : > { %v4044_v35 = vpop.f32.mrb[35].mxu1  ;;  %v4065_v39 = vmax.f32 %v4042_v50, 0.0 }
0x11e0   : > { %v4066_v38 = vmax.f32 %v4044_v35, 0.0 }
0x11e2   : > { %v4048_v7 = vpop.f32.mrb[36].mxu1  ;;  %4169 = vmatprep.mubr.f32.mxu0 %v4066_v38 }
0x11e3   : > { %v4050_v6 = vpop.f32.mrb[37].mxu1  ;;  %4170 = vmatmul.mubr.f32.vlgmr.msra.gmra.mrb[50].mxu0 %v4065_v39  ;;  %v4067_v9 = vmax.f32 %v4048_v7, 0.0 }
0x11e4   : > { %v4068_v49 = vmax.f32 %v4050_v6, 0.0 }
0x11e6   : > { %v4054_v8 = vpop.f32.mrb[38].mxu1  ;;  %4174 = vmatprep.mubr.f32.mxu0 %v4068_v49 }
0x11e7   : > { %v4056_v10 = vpop.f32.mrb[39].mxu1  ;;  %4175 = vmatmul.mubr.f32.gmra.mrb[52].mxu0 %v4067_v9  ;;  %v4069_v40 = vmax.f32 %v4054_v8, 0.0 }
0x11e8   : > { %v4070_v15 = vmax.f32 %v4056_v10, 0.0 }
0x11ea   : > { %v4060_v41 = vpop.f32.mrb[40].mxu1  ;;  %4179 = vmatprep.mubr.f32.mxu0 %v4070_v15 }
0x11eb   : > { %v4062_v42 = vpop.f32.mrb[41].mxu1  ;;  %4180 = vmatmul.mubr.f32.gmra.mrb[54].mxu0 %v4069_v40  ;;  %v4071_v48 = vmax.f32 %v4060_v41, 0.0 }
0x11ec   : > { %v4072_v43 = vmax.f32 %v4062_v42, 0.0 }
0x11ee   : > { %4184 = vmatprep.mubr.f32.mxu0 %v4072_v43 }
0x11ef   : > { %4185 = vmatmul.mubr.f32.gmra.mrb[56].mxu0 %v4071_v48 }
0x12b6   : > { %v4998_v52 = vpop.f32.mrb[50].mxu0 }
0x12b7   : > { %v4999_v53 = vpop.f32.mrb[51].mxu0 }
0x12b8   : > { %v5000_v54 = vadd.f32 %v4999_v53, %v4998_v52 }
0x12ba   : > { %4190 = vadd.xlane.f32.xlu0 %v5000_v54  ;;  %v5001_v55 = vpop.f32.mrb[52].mxu0 }
0x12bb   : > { %v5002_v57 = vpop.f32.mrb[53].mxu0 }
0x12bc   : > { %v5003_v60 = vadd.f32 %v5002_v57, %v5001_v55 }
0x12be   : > { %4192 = vadd.xlane.f32.xlu1 %v5003_v60  ;;  %v5004_v28 = vpop.f32.mrb[54].mxu0 }
0x12bf   : > { %v5005_v61 = vpop.f32.mrb[55].mxu0 }
0x12c0   : > { %v5006_v62 = vadd.f32 %v5005_v61, %v5004_v28 }
0x12c2   : > { %4194 = vadd.xlane.f32.xlu0 %v5006_v62  ;;  %v5007_v63 = vpop.f32.mrb[56].mxu0 }
0x12c3   : > { %v5008_v59 = vpop.f32.mrb[57].mxu0 }
0x12c4   : > { %v5009_v23 = vadd.f32 %v5008_v59, %v5007_v63 }
0x12c6   : > { %4196 = vadd.xlane.f32.xlu1 %v5009_v23 }
0x1347   : > { %v4191_v0 = vpop.xlane.xlu0 %4190 }
0x1348   : > { %v4198_v2 = vmul.f32 0.0078125, %v4191_v0 }
0x134a   : > { %v4202_v3 = vsub.f32 %v5000_v54, %v4198_v2 }
0x134b   : > { %v4193_v11 = vpop.xlane.xlu1 %4192 }
0x134c   : > { %v4199_v13 = vmul.f32 0.0078125, %v4193_v11  ;;  %v4206_v14 = vmul.f32 %v4202_v3, %v4202_v3 }
0x134e   : > { %v4203_v1 = vsub.f32 %v5003_v60, %v4199_v13  ;;  %4210 = vadd.xlane.f32.xlu0 %v4206_v14 }
0x134f   : > { %v4195_v4 = vpop.xlane.xlu0 %4194 }
0x1350   : > { %v4200_v12 = vmul.f32 0.0078125, %v4195_v4  ;;  %v4207_v45 = vmul.f32 %v4203_v1, %v4203_v1 }
0x1352   : > { %v4204_v16 = vsub.f32 %v5006_v62, %v4200_v12  ;;  %4212 = vadd.xlane.f32.xlu1 %v4207_v45 }
0x1353   : > { %v4197_v44 = vpop.xlane.xlu1 %4196 }
0x1354   : > { %v4201_v36 = vmul.f32 0.0078125, %v4197_v44  ;;  %v4208_v47 = vmul.f32 %v4204_v16, %v4204_v16 }
0x1356   : > { %v4205_v17 = vsub.f32 %v5009_v23, %v4201_v36  ;;  %4214 = vadd.xlane.f32.xlu0 %v4208_v47 }
0x1358   : > { %v4209_v18 = vmul.f32 %v4205_v17, %v4205_v17 }
0x135a   : > { %4216 = vadd.xlane.f32.xlu1 %v4209_v18 }
0x13db   : > { %v4211_v46 = vpop.xlane.xlu0 %4210 }
0x13dc   : > { %v4218_v51 = vmul.f32 0.0078125, %v4211_v46 }
0x13de   : > { %v4222_v37 = vadd.f32 1e-05, %v4218_v51 }
0x13df   : > { %v4213_v19 = vpop.xlane.xlu1 %4212 }
0x13e0   : > { %6360 = vrsqrt.f32 %v4222_v37  ;;  %v4219_v20 = vmul.f32 0.0078125, %v4213_v19 }
0x13e2   : > { %v4223_v21 = vadd.f32 1e-05, %v4219_v20 }
0x13e3   : > { %v4215_v22 = vpop.xlane.xlu0 %4214 }
0x13e4   : > { %6362 = vrsqrt.f32 %v4223_v21  ;;  %v4220_v24 = vmul.f32 0.0078125, %v4215_v22 }
0x13e6   : > { %v4224_v25 = vadd.f32 1e-05, %v4220_v24 }
0x13e7   : > { %v4217_v26 = vpop.xlane.xlu1 %4216 }
0x13e8   : > { %6364 = vrsqrt.f32 %v4224_v25  ;;  %v4221_v30 = vmul.f32 0.0078125, %v4217_v26 }
0x13ea   : > { %v6361_v31 = vpop.eup %6360  ;;  %v4225_v33 = vadd.f32 1e-05, %v4221_v30 }
0x13eb   : > { %v4230_v5 = vmul.f32 %v6361_v31, %v4202_v3 }
0x13ec   : > { %6366 = vrsqrt.f32 %v4225_v33 }
0x13ed   : > { %v4241_v50 = vmul.f32 %v4616_v32, %v4230_v5 }
0x13ee   : > { %v6363_v35 = vpop.eup %6362 }
0x13ef   : > { %v4252_v38 = vadd.f32 %v4617_v34, %v4241_v50  ;;  %v4231_v39 = vmul.f32 %v6363_v35, %v4203_v1 }
0x13f1   : > { %v4256_v7 = vadd.f32 %v7776_v27, %v4252_v38  ;;  %v4242_v6 = vmul.f32 %v4616_v32, %v4231_v39 }
0x13f2   : > { %v6365_v49 = vpop.eup %6364 }
0x13f3   : > { %v4253_v9 = vadd.f32 %v4617_v34, %v4242_v6  ;;  %v4232_v8 = vmul.f32 %v6365_v49, %v4204_v16  ;;  %4260 = vst [vmem:[%s544_s25] sm:$0xff] %v4256_v7 }
0x13f5   : > { %v4257_v10 = vadd.f32 %v7781_v29, %v4253_v9  ;;  %v4243_v15 = vmul.f32 %v4616_v32, %v4232_v8 }
0x13f6   : > { %v6367_v40 = vpop.eup %6366 }
0x13f7   : > { %v4254_v41 = vadd.f32 %v4617_v34, %v4243_v15  ;;  %v4233_v42 = vmul.f32 %v6367_v40, %v4205_v17  ;;  %4261 = vst [vmem:[%s544_s25 + $0x8] sm:$0xff] %v4257_v10 }
0x13f9   : > { %v4258_v43 = vadd.f32 %v7786_v56, %v4254_v41  ;;  %v4244_v48 = vmul.f32 %v4616_v32, %v4233_v42 }
0x13fb   : > { %v4255_v27 = vadd.f32 %v4617_v34, %v4244_v48  ;;  %4262 = vst [vmem:[%s544_s25 + $0x10] sm:$0xff] %v4258_v43 }
0x13fd   : > { %v4259_v29 = vadd.f32 %v7791_v58, %v4255_v27 }
0x13ff   : > { %4263 = vst [vmem:[%s544_s25 + $0x18] sm:$0xff] %v4259_v29 }
0x1400   : > { %6389 = shalt.err (!%p6386_p3)
}
0x1401   : > { %s6390_s29 = scalar_lea.hbm %s7822_s24, 512  ;;  %s6394_s21 = scalar_lea.hbm %s7904_s26, 1024 }
0x1402   : > { %p6391_p4 = scmp.ne.s32.totalorder %s7822_s24, %s6390_s29  ;;  %p6395_p9 = scmp.lt.u32.totalorder %s7822_s24, %s7904_s26 }
0x1403   : > { %p6396_p10 = scmp.lt.u32.totalorder %s6394_s21, %s6390_s29  ;;  %p6398_p12 = scmp.lt.u32.totalorder %s6390_s29, %s7822_s24 }
0x1404   : > { %p6392_p7 = pnand %p6391_p4, %p6562_p5 }
0x1405   : > { %p6397_p11 = por %p6396_p10, %p6395_p9 }
0x1406   : > { %p6393_p8 = pneg %p6392_p7 }
0x1407   : > { %p6399_p13 = por %p6398_p12, %p6397_p11 }
0x1409   : > { %p6400_p0 = pnand %p6399_p13, %p6393_p8 }
0x140b   : > { %6403 = shalt.err (!%p6400_p0)
}
0x140c   : > { %s6442_s22 = smov 128   ;;  %s6443_s18 = smov 8  }
0x140d   : > { %6246 = dma.vmem_to_hbm [thread:$0]  (%p6562_p5), %s7824_s16, 512, %s7822_s24, %s7829_s17, %s6442_s22, %s6442_s22, %s6443_s18  }
0x140e PF: > { %s7905_s27 = sld [smem:[#allocation7_spill]]  ;;  %s7906_s20 = sld [smem:[#allocation5_spill]] }
0x1414   : > { %p6252_p1 = scmp.ge.s32.totalorder %s7905_s27, 2  ;;  %s4294_s25 = sand.u32 1, %s7906_s20  }
0x1415   : > { %s4295_s29 = scalar_lea.sflag [#allocation3], %s4294_s25 }
0x1416   : > { %p6249_p2 = pnand %p6252_p1, %p6566_p6 }
0x1418   : > { %6421 = dma.done.wait (!%p6249_p2), %s4295_s29, 512  }
0x1419   : > { %6423 = vsyncadd (!%p6249_p2), %s4295_s29, 4294966784  ;;  %s7908_s21 = sld [smem:[#allocation8_spill]]  ;;  %s7909_s30 = sld [smem:[#allocation6_spill]] }
0x141a   : > { %s7910_s20 = sld [smem:[#allocation9_spill]]  ;;  %s7911_s18 = smov %s6430_s19 }
0x141f   : > { %p25_p3 = scmp.ge.s32.totalorder %s7908_s21, 4   ;;  %s7912_s19 = smov %s7909_s30 }
0x1421   :  { %27 = sbr.rel (!%p25_p3) target bundleno = 5 (0x5), region = 136 }
0x1428   :  { %4300 = vsyncpa [#allocation3], 1 }
0x1429   :  { %4302 = vsyncpa [#allocation3 + $0x1], 1 }

</bundles_post_ra>
